<compile_context>
chip_gen: v7x
topology: tpu7x:2x2x1
jax: 0.10.0
libtpu: 0.0.40
codegen_flags: <defaults>
</compile_context>

<pallas_src>
import functools

import numpy as np
import jax
import jax.numpy as jnp
from jax.experimental import pallas as pl
from jax.experimental.pallas import tpu as pltpu

# ----------------------- model hyper-parameters (from __init__) -----------------------
ARCHITECTURE = "EQUAL"
BATCH_NORM = "YES"
NUM_CONV_LAYERS = 2
NUM_FILTERS = 8
CONV_FILTER_SIZE = 3
DROPOUT = 0.3          # identity at inference
DENSE_NEURONS = 32
NUM_CLASSES = 10
INPUT_CHANNELS = 3
IMAGE_DIM = 16
MAXPOOL = 2
BN_EPS = 1e-5

K = CONV_FILTER_SIZE
OH1 = IMAGE_DIM - K + 1                 # 14  conv1 output spatial dim
PH1 = (OH1 - MAXPOOL) // 2 + 1          # 7   pool1 output spatial dim
OH2 = PH1 - K + 1                       # 5   conv2 output spatial dim
PH2 = (OH2 - MAXPOOL) // 2 + 1          # 2   pool2 output spatial dim
FLAT_DIM = PH2 * PH2 * NUM_FILTERS      # 32  flattened FC input


# ------------------------------- fused Pallas kernel -----------------------------------
def _conv_pool_stage(a, t_ref, shift_ref, se_ref, so_ref, re_ref, ro_ref, oh):
    """One Conv2d(valid)+BN(eval)+ReLU+MaxPool2d(2,2) stage on a single image plane.

    a: (H_in, W_in*C_in)  ->  returns pooled (PH, PW*OC).
    Conv = sum over kh of (row-shifted slice) @ (block-Toeplitz weight with BN folded in).
    Pool = elementwise max over 0/1-selection matmuls (pure copies).
    """
    acc = jnp.dot(a[0:oh, :], t_ref[0], preferred_element_type=jnp.float32)
    for kh in range(1, K):
        acc = acc + jnp.dot(a[kh:kh + oh, :], t_ref[kh],
                            preferred_element_type=jnp.float32)
    y = jnp.maximum(acc + shift_ref[...], 0.0)                      # (OH, OW*OC)
    yw = jnp.maximum(jnp.dot(y, se_ref[...], preferred_element_type=jnp.float32),
                     jnp.dot(y, so_ref[...], preferred_element_type=jnp.float32))
    return jnp.maximum(jnp.dot(re_ref[...], yw, preferred_element_type=jnp.float32),
                       jnp.dot(ro_ref[...], yw, preferred_element_type=jnp.float32))


def _fused_cnn_kernel(x_ref,
                      t1_ref, sh1_ref, s1e_ref, s1o_ref, r1e_ref, r1o_ref,
                      t2_ref, sh2_ref, s2e_ref, s2o_ref, r2e_ref, r2o_ref,
                      fc1w_ref, fc1b_ref, fc2w_ref, fc2b_ref,
                      o_ref):
    # One image per grid step: (1, H, W*C) block -> (H, W*C)
    a = x_ref[0]
    p1 = _conv_pool_stage(a, t1_ref, sh1_ref, s1e_ref, s1o_ref, r1e_ref, r1o_ref, OH1)
    # TODO(synk): nn.Dropout is identity in eval mode; training-mode RNG masking not implemented.
    p2 = _conv_pool_stage(p1, t2_ref, sh2_ref, s2e_ref, s2o_ref, r2e_ref, r2o_ref, OH2)

    # Flatten + FC head. fc1 weight rows are pre-permuted at init to the kernel's
    # (h, w, c) layout, so the NCHW flatten order is honoured with no transpose.
    chunk = PH2 * NUM_FILTERS
    h = fc1b_ref[...]
    for hh in range(PH2):
        h = h + jnp.dot(p2[hh:hh + 1, :], fc1w_ref[hh * chunk:(hh + 1) * chunk, :],
                        preferred_element_type=jnp.float32)
    h = jnp.maximum(h, 0.0)                                          # (1, DENSE_NEURONS)
    o_ref[0] = jnp.dot(h, fc2w_ref[...], preferred_element_type=jnp.float32) + fc2b_ref[...]


# ------------------------------ kernel wrapper ------------------------------------------
def _packed_inputs(packed):
    c1, c2 = packed["conv"]
    return [c1["t"], c1["shift"], c1["se"], c1["so"], c1["re"], c1["ro"],
            c2["t"], c2["shift"], c2["se"], c2["so"], c2["re"], c2["ro"],
            packed["fc1_w"], packed["fc1_b"], packed["fc2_w"], packed["fc2_b"]]


def _flops_per_image():
    f = 0
    f += 2 * K * OH1 * (IMAGE_DIM * INPUT_CHANNELS) * (OH1 * NUM_FILTERS)
    f += 2 * 2 * OH1 * (OH1 * NUM_FILTERS) * (PH1 * NUM_FILTERS)
    f += 2 * 2 * PH1 * OH1 * (PH1 * NUM_FILTERS)
    f += 2 * K * OH2 * (PH1 * NUM_FILTERS) * (OH2 * NUM_FILTERS)
    f += 2 * 2 * OH2 * (OH2 * NUM_FILTERS) * (PH2 * NUM_FILTERS)
    f += 2 * 2 * PH2 * OH2 * (PH2 * NUM_FILTERS)
    f += 2 * FLAT_DIM * DENSE_NEURONS + 2 * DENSE_NEURONS * NUM_CLASSES
    return f


def cnn_forward(x_nchw, packed):
    n = x_nchw.shape[0]
    # One cheap layout op outside the kernel: NCHW -> (N, H, W*C) image row-planes.
    x = jnp.transpose(x_nchw, (0, 2, 3, 1)).reshape(n, IMAGE_DIM, IMAGE_DIM * INPUT_CHANNELS)

    w_in = _packed_inputs(packed)
    weight_specs = [pl.BlockSpec(tuple(w.shape), lambda i, nd=w.ndim: (0,) * nd)
                    for w in w_in]
    bytes_accessed = 4 * (x.size + sum(int(w.size) for w in w_in) + n * NUM_CLASSES)

    out = pl.pallas_call(
        _fused_cnn_kernel,
        out_shape=jax.ShapeDtypeStruct((n, 1, NUM_CLASSES), jnp.float32),
        grid=(n,),
        in_specs=[pl.BlockSpec((1, IMAGE_DIM, IMAGE_DIM * INPUT_CHANNELS),
                               lambda i: (i, 0, 0))] + weight_specs,
        out_specs=pl.BlockSpec((1, 1, NUM_CLASSES), lambda i: (i, 0, 0)),
        compiler_params=pltpu.CompilerParams(dimension_semantics=("parallel",)),
        cost_estimate=pl.CostEstimate(flops=n * _flops_per_image(),
                                      transcendentals=0,
                                      bytes_accessed=bytes_accessed),
    )(x, *w_in)
    return out.reshape(n, NUM_CLASSES)


# ------------------------- parameter packing (one-time, at init) -------------------------
def _pack_conv_layer(w, b, gamma, beta, mean, var, h_in, c_in, oc):
    """Fold eval BN into the conv and build block-Toeplitz / pooling-selection matrices."""
    scale = gamma / np.sqrt(var + BN_EPS)                     # (oc,)
    wf = w * scale[:, None, None, None]                       # (oc, c_in, K, K), BN-folded
    bf = b * scale + (beta - mean * scale)                    # (oc,) folded bias+shift
    oh = h_in - K + 1
    ph = (oh - MAXPOOL) // 2 + 1

    # T[kh][(w+kw)*c_in + c, w*oc + o] = wf[o, c, kh, kw]  (square images: OW == OH)
    t = np.zeros((K, h_in * c_in, oh * oc), np.float32)
    for kh in range(K):
        for kw in range(K):
            blk = wf[:, :, kh, kw].T                          # (c_in, oc)
            for ow in range(oh):
                t[kh, (ow + kw) * c_in:(ow + kw + 1) * c_in, ow * oc:(ow + 1) * oc] += blk
    shift = np.tile(bf, oh)[None, :].astype(np.float32)       # (1, oh*oc)

    # 0/1 selection matrices implementing floor-mode 2x2/stride-2 pooling via max of copies
    se = np.zeros((oh * oc, ph * oc), np.float32)
    so = np.zeros((oh * oc, ph * oc), np.float32)
    re = np.zeros((ph, oh), np.float32)
    ro = np.zeros((ph, oh), np.float32)
    eye = np.eye(oc, dtype=np.float32)
    for p in range(ph):
        se[(2 * p) * oc:(2 * p + 1) * oc, p * oc:(p + 1) * oc] = eye
        so[(2 * p + 1) * oc:(2 * p + 2) * oc, p * oc:(p + 1) * oc] = eye
        re[p, 2 * p] = 1.0
        ro[p, 2 * p + 1] = 1.0

    layer = dict(t=jnp.asarray(t), shift=jnp.asarray(shift),
                 se=jnp.asarray(se), so=jnp.asarray(so),
                 re=jnp.asarray(re), ro=jnp.asarray(ro))
    return layer, oh, ph


def _pack_fc(fc1_w, fc1_b, fc2_w, fc2_b, ph, oc):
    """Permute fc1 columns from PyTorch NCHW flatten (c,h,w) to the kernel's (h,w,c)."""
    d_in = ph * ph * oc
    w1p = np.zeros((d_in, fc1_w.shape[0]), np.float32)
    for h in range(ph):
        for w in range(ph):
            for c in range(oc):
                w1p[h * ph * oc + w * oc + c, :] = fc1_w[:, c * ph * ph + h * ph + w]
    return dict(fc1_w=jnp.asarray(w1p),
                fc1_b=jnp.asarray(fc1_b[None, :]),
                fc2_w=jnp.asarray(fc2_w.T),
                fc2_b=jnp.asarray(fc2_b[None, :]))


def pack_params(raw):
    packed = {"conv": []}
    h_in, c_in = IMAGE_DIM, INPUT_CHANNELS
    for lp in raw["conv"]:
        layer, _, ph = _pack_conv_layer(
            np.asarray(lp["w"]), np.asarray(lp["b"]), np.asarray(lp["gamma"]),
            np.asarray(lp["beta"]), np.asarray(lp["mean"]), np.asarray(lp["var"]),
            h_in, c_in, NUM_FILTERS)
        packed["conv"].append(layer)
        h_in, c_in = ph, NUM_FILTERS
    packed.update(_pack_fc(np.asarray(raw["fc1_w"]), np.asarray(raw["fc1_b"]),
                           np.asarray(raw["fc2_w"]), np.asarray(raw["fc2_b"]),
                           h_in, c_in))
    return packed


# ----------------------------- deterministic parameters ---------------------------------
def init_params(key):
    raw = {"conv": []}
    in_ch = INPUT_CHANNELS
    for _ in range(NUM_CONV_LAYERS):
        oc = NUM_FILTERS  # architecture == 'EQUAL'
        key, kw, kb, kg, kbt, km, kv = jax.random.split(key, 7)
        w = 0.1 * jax.random.normal(kw, (oc, in_ch, K, K), jnp.float32)
        b = 0.1 * jax.random.normal(kb, (oc,), jnp.float32)
        gamma = 1.0 + 0.1 * jax.random.normal(kg, (oc,), jnp.float32)
        beta = 0.1 * jax.random.normal(kbt, (oc,), jnp.float32)
        mean = 0.1 * jax.random.normal(km, (oc,), jnp.float32)
        var = 1.0 + 0.1 * jnp.abs(jax.random.normal(kv, (oc,), jnp.float32))
        raw["conv"].append(dict(w=w, b=b, gamma=gamma, beta=beta, mean=mean, var=var))
        in_ch = oc

    # output spatial dim after the conv/pool stack (compute_output_dim)
    dim = IMAGE_DIM
    for _ in range(NUM_CONV_LAYERS):
        dim = ((dim - K + 1) - MAXPOOL) // 2 + 1
    input_dense = dim * dim * in_ch

    key, k1, k2, k3, k4 = jax.random.split(key, 5)
    fc1_w = 0.1 * jax.random.normal(k1, (DENSE_NEURONS, input_dense), jnp.float32)  # (out, in)
    fc1_b = 0.1 * jax.random.normal(k2, (DENSE_NEURONS,), jnp.float32)
    fc2_w = 0.1 * jax.random.normal(k3, (NUM_CLASSES, DENSE_NEURONS), jnp.float32)
    fc2_b = 0.1 * jax.random.normal(k4, (NUM_CLASSES,), jnp.float32)
    raw.update(fc1_w=fc1_w, fc1_b=fc1_b, fc2_w=fc2_w, fc2_b=fc2_b)

    packed = pack_params(raw)
    return raw, packed


# --------------------------------- pure-JAX reference -----------------------------------
def reference_forward(x, raw):
    y = x
    for lp in raw["conv"]:
        y = jax.lax.conv_general_dilated(y, lp["w"], (1, 1), "VALID",
                                         dimension_numbers=("NCHW", "OIHW", "NCHW"))
        y = y + lp["b"][None, :, None, None]
        y = ((y - lp["mean"][None, :, None, None])
             / jnp.sqrt(lp["var"][None, :, None, None] + BN_EPS)
             * lp["gamma"][None, :, None, None] + lp["beta"][None, :, None, None])
        y = jnp.maximum(y, 0.0)
        y = jax.lax.reduce_window(y, -jnp.inf, jax.lax.max,
                                  (1, 1, MAXPOOL, MAXPOOL), (1, 1, 2, 2), "VALID")
    y = y.reshape(y.shape[0], -1)
    h = jnp.maximum(y @ raw["fc1_w"].T + raw["fc1_b"], 0.0)
    return h @ raw["fc2_w"].T + raw["fc2_b"]


# -------------------------------------- main ---------------------------------------------
if __name__ == "__main__":
    key = jax.random.PRNGKey(0)
    key, kx = jax.random.split(key)
    x = jax.random.normal(kx, (2, INPUT_CHANNELS, IMAGE_DIM, IMAGE_DIM), jnp.float32)

    raw_params, packed_params = init_params(key)

    fwd = jax.jit(functools.partial(cnn_forward, packed=packed_params))
    out = jax.block_until_ready(fwd(x))

    ref = jax.block_until_ready(reference_forward(x, raw_params))
    assert out.shape == (2, NUM_CLASSES), out.shape
    assert jnp.allclose(out, ref, atol=2e-2, rtol=2e-2), (out, ref)

    print("KERNEL_OK")
</pallas_src>

<mosaic_0001>
module attributes {stable_mosaic.version = 11 : i64} {
  func.func @_fused_cnn_kernel(%arg0: i32, %arg1: memref<1x16x48xf32, #tpu.memory_space<vmem>>, %arg2: memref<3x48x112xf32, #tpu.memory_space<vmem>>, %arg3: memref<1x112xf32, #tpu.memory_space<vmem>>, %arg4: memref<112x56xf32, #tpu.memory_space<vmem>>, %arg5: memref<112x56xf32, #tpu.memory_space<vmem>>, %arg6: memref<7x14xf32, #tpu.memory_space<vmem>>, %arg7: memref<7x14xf32, #tpu.memory_space<vmem>>, %arg8: memref<3x56x40xf32, #tpu.memory_space<vmem>>, %arg9: memref<1x40xf32, #tpu.memory_space<vmem>>, %arg10: memref<40x16xf32, #tpu.memory_space<vmem>>, %arg11: memref<40x16xf32, #tpu.memory_space<vmem>>, %arg12: memref<2x5xf32, #tpu.memory_space<vmem>>, %arg13: memref<2x5xf32, #tpu.memory_space<vmem>>, %arg14: memref<32x32xf32, #tpu.memory_space<vmem>>, %arg15: memref<1x32xf32, #tpu.memory_space<vmem>>, %arg16: memref<32x10xf32, #tpu.memory_space<vmem>>, %arg17: memref<1x10xf32, #tpu.memory_space<vmem>>, %arg18: memref<1x1x10xf32, #tpu.memory_space<vmem>>) attributes {dimension_semantics = [#tpu.dimension_semantics<parallel>], iteration_bounds = array<i64: 2>, scalar_prefetch = 0 : i64, scratch_operands = 0 : i64, tpu.core_type = #tpu.core_type<tc>, window_params = [{transform_indices = @transform_0, window_bounds = array<i64: 1, 16, 48>}, {pipeline_mode = #tpu.pipeline_mode<synchronous>, transform_indices = @transform_1, window_bounds = array<i64: 3, 48, 112>}, {pipeline_mode = #tpu.pipeline_mode<synchronous>, transform_indices = @transform_2, window_bounds = array<i64: 1, 112>}, {pipeline_mode = #tpu.pipeline_mode<synchronous>, transform_indices = @transform_3, window_bounds = array<i64: 112, 56>}, {pipeline_mode = #tpu.pipeline_mode<synchronous>, transform_indices = @transform_4, window_bounds = array<i64: 112, 56>}, {pipeline_mode = #tpu.pipeline_mode<synchronous>, transform_indices = @transform_5, window_bounds = array<i64: 7, 14>}, {pipeline_mode = #tpu.pipeline_mode<synchronous>, transform_indices = @transform_6, window_bounds = array<i64: 7, 14>}, {pipeline_mode = #tpu.pipeline_mode<synchronous>, transform_indices = @transform_7, window_bounds = array<i64: 3, 56, 40>}, {pipeline_mode = #tpu.pipeline_mode<synchronous>, transform_indices = @transform_8, window_bounds = array<i64: 1, 40>}, {pipeline_mode = #tpu.pipeline_mode<synchronous>, transform_indices = @transform_9, window_bounds = array<i64: 40, 16>}, {pipeline_mode = #tpu.pipeline_mode<synchronous>, transform_indices = @transform_10, window_bounds = array<i64: 40, 16>}, {pipeline_mode = #tpu.pipeline_mode<synchronous>, transform_indices = @transform_11, window_bounds = array<i64: 2, 5>}, {pipeline_mode = #tpu.pipeline_mode<synchronous>, transform_indices = @transform_12, window_bounds = array<i64: 2, 5>}, {pipeline_mode = #tpu.pipeline_mode<synchronous>, transform_indices = @transform_13, window_bounds = array<i64: 32, 32>}, {pipeline_mode = #tpu.pipeline_mode<synchronous>, transform_indices = @transform_14, window_bounds = array<i64: 1, 32>}, {pipeline_mode = #tpu.pipeline_mode<synchronous>, transform_indices = @transform_15, window_bounds = array<i64: 32, 10>}, {pipeline_mode = #tpu.pipeline_mode<synchronous>, transform_indices = @transform_16, window_bounds = array<i64: 1, 10>}, {transform_indices = @transform_17, window_bounds = array<i64: 1, 1, 10>}]} {
    %c0 = arith.constant 0 : index
    %c0_0 = arith.constant 0 : index
    %c0_1 = arith.constant 0 : index
    %0 = vector.load %arg1[%c0, %c0_0, %c0_1] : memref<1x16x48xf32, #tpu.memory_space<vmem>>, vector<1x16x48xf32>
    %1 = vector.shape_cast %0 : vector<1x16x48xf32> to vector<16x48xf32>
    %2 = vector.extract_strided_slice %1 {offsets = [0, 0], sizes = [14, 48], strides = [1, 1]} : vector<16x48xf32> to vector<14x48xf32>
    %c0_2 = arith.constant 0 : index
    %c0_3 = arith.constant 0 : index
    %c0_4 = arith.constant 0 : index
    %3 = vector.load %arg2[%c0_2, %c0_3, %c0_4] : memref<3x48x112xf32, #tpu.memory_space<vmem>>, vector<1x48x112xf32>
    %4 = vector.shape_cast %3 : vector<1x48x112xf32> to vector<48x112xf32>
    %cst = arith.constant dense<0.000000e+00> : vector<14x112xf32>
    %5 = tpu.matmul %2, %4, %cst {dimension_numbers = #tpu.dot_dimension_numbers<[1], [0], [0], [1], [0, 0, 1, 1], [], []>} : vector<14x48xf32>, vector<48x112xf32>, vector<14x112xf32> -> vector<14x112xf32>
    %6 = vector.extract_strided_slice %1 {offsets = [1, 0], sizes = [14, 48], strides = [1, 1]} : vector<16x48xf32> to vector<14x48xf32>
    %c1 = arith.constant 1 : index
    %c0_5 = arith.constant 0 : index
    %c0_6 = arith.constant 0 : index
    %7 = vector.load %arg2[%c1, %c0_5, %c0_6] : memref<3x48x112xf32, #tpu.memory_space<vmem>>, vector<1x48x112xf32>
    %8 = vector.shape_cast %7 : vector<1x48x112xf32> to vector<48x112xf32>
    %cst_7 = arith.constant dense<0.000000e+00> : vector<14x112xf32>
    %9 = tpu.matmul %6, %8, %cst_7 {dimension_numbers = #tpu.dot_dimension_numbers<[1], [0], [0], [1], [0, 0, 1, 1], [], []>} : vector<14x48xf32>, vector<48x112xf32>, vector<14x112xf32> -> vector<14x112xf32>
    %10 = arith.addf %5, %9 : vector<14x112xf32>
    %11 = vector.extract_strided_slice %1 {offsets = [2, 0], sizes = [14, 48], strides = [1, 1]} : vector<16x48xf32> to vector<14x48xf32>
    %c2 = arith.constant 2 : index
    %c0_8 = arith.constant 0 : index
    %c0_9 = arith.constant 0 : index
    %12 = vector.load %arg2[%c2, %c0_8, %c0_9] : memref<3x48x112xf32, #tpu.memory_space<vmem>>, vector<1x48x112xf32>
    %13 = vector.shape_cast %12 : vector<1x48x112xf32> to vector<48x112xf32>
    %cst_10 = arith.constant dense<0.000000e+00> : vector<14x112xf32>
    %14 = tpu.matmul %11, %13, %cst_10 {dimension_numbers = #tpu.dot_dimension_numbers<[1], [0], [0], [1], [0, 0, 1, 1], [], []>} : vector<14x48xf32>, vector<48x112xf32>, vector<14x112xf32> -> vector<14x112xf32>
    %15 = arith.addf %10, %14 : vector<14x112xf32>
    %c0_11 = arith.constant 0 : index
    %c0_12 = arith.constant 0 : index
    %16 = vector.load %arg3[%c0_11, %c0_12] : memref<1x112xf32, #tpu.memory_space<vmem>>, vector<1x112xf32>
    %17 = vector.broadcast %16 : vector<1x112xf32> to vector<14x112xf32>
    %18 = arith.addf %15, %17 : vector<14x112xf32>
    %cst_13 = arith.constant 0.000000e+00 : f32
    %19 = vector.broadcast %cst_13 : f32 to vector<14x112xf32>
    %20 = arith.maximumf %18, %19 : vector<14x112xf32>
    %c0_14 = arith.constant 0 : index
    %c0_15 = arith.constant 0 : index
    %21 = vector.load %arg4[%c0_14, %c0_15] : memref<112x56xf32, #tpu.memory_space<vmem>>, vector<112x56xf32>
    %cst_16 = arith.constant dense<0.000000e+00> : vector<14x56xf32>
    %22 = tpu.matmul %20, %21, %cst_16 {dimension_numbers = #tpu.dot_dimension_numbers<[1], [0], [0], [1], [0, 0, 1, 1], [], []>} : vector<14x112xf32>, vector<112x56xf32>, vector<14x56xf32> -> vector<14x56xf32>
    %c0_17 = arith.constant 0 : index
    %c0_18 = arith.constant 0 : index
    %23 = vector.load %arg5[%c0_17, %c0_18] : memref<112x56xf32, #tpu.memory_space<vmem>>, vector<112x56xf32>
    %cst_19 = arith.constant dense<0.000000e+00> : vector<14x56xf32>
    %24 = tpu.matmul %20, %23, %cst_19 {dimension_numbers = #tpu.dot_dimension_numbers<[1], [0], [0], [1], [0, 0, 1, 1], [], []>} : vector<14x112xf32>, vector<112x56xf32>, vector<14x56xf32> -> vector<14x56xf32>
    %25 = arith.maximumf %22, %24 : vector<14x56xf32>
    %c0_20 = arith.constant 0 : index
    %c0_21 = arith.constant 0 : index
    %26 = vector.load %arg6[%c0_20, %c0_21] : memref<7x14xf32, #tpu.memory_space<vmem>>, vector<7x14xf32>
    %cst_22 = arith.constant dense<0.000000e+00> : vector<7x56xf32>
    %27 = tpu.matmul %26, %25, %cst_22 {dimension_numbers = #tpu.dot_dimension_numbers<[1], [0], [0], [1], [0, 0, 1, 1], [], []>} : vector<7x14xf32>, vector<14x56xf32>, vector<7x56xf32> -> vector<7x56xf32>
    %c0_23 = arith.constant 0 : index
    %c0_24 = arith.constant 0 : index
    %28 = vector.load %arg7[%c0_23, %c0_24] : memref<7x14xf32, #tpu.memory_space<vmem>>, vector<7x14xf32>
    %cst_25 = arith.constant dense<0.000000e+00> : vector<7x56xf32>
    %29 = tpu.matmul %28, %25, %cst_25 {dimension_numbers = #tpu.dot_dimension_numbers<[1], [0], [0], [1], [0, 0, 1, 1], [], []>} : vector<7x14xf32>, vector<14x56xf32>, vector<7x56xf32> -> vector<7x56xf32>
    %30 = arith.maximumf %27, %29 : vector<7x56xf32>
    %31 = vector.extract_strided_slice %30 {offsets = [0, 0], sizes = [5, 56], strides = [1, 1]} : vector<7x56xf32> to vector<5x56xf32>
    %c0_26 = arith.constant 0 : index
    %c0_27 = arith.constant 0 : index
    %c0_28 = arith.constant 0 : index
    %32 = vector.load %arg8[%c0_26, %c0_27, %c0_28] : memref<3x56x40xf32, #tpu.memory_space<vmem>>, vector<1x56x40xf32>
    %33 = vector.shape_cast %32 : vector<1x56x40xf32> to vector<56x40xf32>
    %cst_29 = arith.constant dense<0.000000e+00> : vector<5x40xf32>
    %34 = tpu.matmul %31, %33, %cst_29 {dimension_numbers = #tpu.dot_dimension_numbers<[1], [0], [0], [1], [0, 0, 1, 1], [], []>} : vector<5x56xf32>, vector<56x40xf32>, vector<5x40xf32> -> vector<5x40xf32>
    %35 = vector.extract_strided_slice %30 {offsets = [1, 0], sizes = [5, 56], strides = [1, 1]} : vector<7x56xf32> to vector<5x56xf32>
    %c1_30 = arith.constant 1 : index
    %c0_31 = arith.constant 0 : index
    %c0_32 = arith.constant 0 : index
    %36 = vector.load %arg8[%c1_30, %c0_31, %c0_32] : memref<3x56x40xf32, #tpu.memory_space<vmem>>, vector<1x56x40xf32>
    %37 = vector.shape_cast %36 : vector<1x56x40xf32> to vector<56x40xf32>
    %cst_33 = arith.constant dense<0.000000e+00> : vector<5x40xf32>
    %38 = tpu.matmul %35, %37, %cst_33 {dimension_numbers = #tpu.dot_dimension_numbers<[1], [0], [0], [1], [0, 0, 1, 1], [], []>} : vector<5x56xf32>, vector<56x40xf32>, vector<5x40xf32> -> vector<5x40xf32>
    %39 = arith.addf %34, %38 : vector<5x40xf32>
    %40 = vector.extract_strided_slice %30 {offsets = [2, 0], sizes = [5, 56], strides = [1, 1]} : vector<7x56xf32> to vector<5x56xf32>
    %c2_34 = arith.constant 2 : index
    %c0_35 = arith.constant 0 : index
    %c0_36 = arith.constant 0 : index
    %41 = vector.load %arg8[%c2_34, %c0_35, %c0_36] : memref<3x56x40xf32, #tpu.memory_space<vmem>>, vector<1x56x40xf32>
    %42 = vector.shape_cast %41 : vector<1x56x40xf32> to vector<56x40xf32>
    %cst_37 = arith.constant dense<0.000000e+00> : vector<5x40xf32>
    %43 = tpu.matmul %40, %42, %cst_37 {dimension_numbers = #tpu.dot_dimension_numbers<[1], [0], [0], [1], [0, 0, 1, 1], [], []>} : vector<5x56xf32>, vector<56x40xf32>, vector<5x40xf32> -> vector<5x40xf32>
    %44 = arith.addf %39, %43 : vector<5x40xf32>
    %c0_38 = arith.constant 0 : index
    %c0_39 = arith.constant 0 : index
    %45 = vector.load %arg9[%c0_38, %c0_39] : memref<1x40xf32, #tpu.memory_space<vmem>>, vector<1x40xf32>
    %46 = vector.broadcast %45 : vector<1x40xf32> to vector<5x40xf32>
    %47 = arith.addf %44, %46 : vector<5x40xf32>
    %cst_40 = arith.constant 0.000000e+00 : f32
    %48 = vector.broadcast %cst_40 : f32 to vector<5x40xf32>
    %49 = arith.maximumf %47, %48 : vector<5x40xf32>
    %c0_41 = arith.constant 0 : index
    %c0_42 = arith.constant 0 : index
    %50 = vector.load %arg10[%c0_41, %c0_42] : memref<40x16xf32, #tpu.memory_space<vmem>>, vector<40x16xf32>
    %cst_43 = arith.constant dense<0.000000e+00> : vector<5x16xf32>
    %51 = tpu.matmul %49, %50, %cst_43 {dimension_numbers = #tpu.dot_dimension_numbers<[1], [0], [0], [1], [0, 0, 1, 1], [], []>} : vector<5x40xf32>, vector<40x16xf32>, vector<5x16xf32> -> vector<5x16xf32>
    %c0_44 = arith.constant 0 : index
    %c0_45 = arith.constant 0 : index
    %52 = vector.load %arg11[%c0_44, %c0_45] : memref<40x16xf32, #tpu.memory_space<vmem>>, vector<40x16xf32>
    %cst_46 = arith.constant dense<0.000000e+00> : vector<5x16xf32>
    %53 = tpu.matmul %49, %52, %cst_46 {dimension_numbers = #tpu.dot_dimension_numbers<[1], [0], [0], [1], [0, 0, 1, 1], [], []>} : vector<5x40xf32>, vector<40x16xf32>, vector<5x16xf32> -> vector<5x16xf32>
    %54 = arith.maximumf %51, %53 : vector<5x16xf32>
    %c0_47 = arith.constant 0 : index
    %c0_48 = arith.constant 0 : index
    %55 = vector.load %arg12[%c0_47, %c0_48] : memref<2x5xf32, #tpu.memory_space<vmem>>, vector<2x5xf32>
    %cst_49 = arith.constant dense<0.000000e+00> : vector<2x16xf32>
    %56 = tpu.matmul %55, %54, %cst_49 {dimension_numbers = #tpu.dot_dimension_numbers<[1], [0], [0], [1], [0, 0, 1, 1], [], []>} : vector<2x5xf32>, vector<5x16xf32>, vector<2x16xf32> -> vector<2x16xf32>
    %c0_50 = arith.constant 0 : index
    %c0_51 = arith.constant 0 : index
    %57 = vector.load %arg13[%c0_50, %c0_51] : memref<2x5xf32, #tpu.memory_space<vmem>>, vector<2x5xf32>
    %cst_52 = arith.constant dense<0.000000e+00> : vector<2x16xf32>
    %58 = tpu.matmul %57, %54, %cst_52 {dimension_numbers = #tpu.dot_dimension_numbers<[1], [0], [0], [1], [0, 0, 1, 1], [], []>} : vector<2x5xf32>, vector<5x16xf32>, vector<2x16xf32> -> vector<2x16xf32>
    %59 = arith.maximumf %56, %58 : vector<2x16xf32>
    %c0_53 = arith.constant 0 : index
    %c0_54 = arith.constant 0 : index
    %60 = vector.load %arg15[%c0_53, %c0_54] : memref<1x32xf32, #tpu.memory_space<vmem>>, vector<1x32xf32>
    %61 = vector.extract_strided_slice %59 {offsets = [0, 0], sizes = [1, 16], strides = [1, 1]} : vector<2x16xf32> to vector<1x16xf32>
    %c0_55 = arith.constant 0 : index
    %c0_56 = arith.constant 0 : index
    %62 = vector.load %arg14[%c0_55, %c0_56] : memref<32x32xf32, #tpu.memory_space<vmem>>, vector<16x32xf32>
    %cst_57 = arith.constant dense<0.000000e+00> : vector<1x32xf32>
    %63 = tpu.matmul %61, %62, %cst_57 {dimension_numbers = #tpu.dot_dimension_numbers<[1], [0], [0], [1], [0, 0, 1, 1], [], []>} : vector<1x16xf32>, vector<16x32xf32>, vector<1x32xf32> -> vector<1x32xf32>
    %64 = arith.addf %60, %63 : vector<1x32xf32>
    %65 = vector.extract_strided_slice %59 {offsets = [1, 0], sizes = [1, 16], strides = [1, 1]} : vector<2x16xf32> to vector<1x16xf32>
    %c16 = arith.constant 16 : index
    %c0_58 = arith.constant 0 : index
    %66 = vector.load %arg14[%c16, %c0_58] : memref<32x32xf32, #tpu.memory_space<vmem>>, vector<16x32xf32>
    %cst_59 = arith.constant dense<0.000000e+00> : vector<1x32xf32>
    %67 = tpu.matmul %65, %66, %cst_59 {dimension_numbers = #tpu.dot_dimension_numbers<[1], [0], [0], [1], [0, 0, 1, 1], [], []>} : vector<1x16xf32>, vector<16x32xf32>, vector<1x32xf32> -> vector<1x32xf32>
    %68 = arith.addf %64, %67 : vector<1x32xf32>
    %cst_60 = arith.constant 0.000000e+00 : f32
    %69 = vector.broadcast %cst_60 : f32 to vector<1x32xf32>
    %70 = arith.maximumf %68, %69 : vector<1x32xf32>
    %c0_61 = arith.constant 0 : index
    %c0_62 = arith.constant 0 : index
    %71 = vector.load %arg16[%c0_61, %c0_62] : memref<32x10xf32, #tpu.memory_space<vmem>>, vector<32x10xf32>
    %cst_63 = arith.constant dense<0.000000e+00> : vector<1x10xf32>
    %72 = tpu.matmul %70, %71, %cst_63 {dimension_numbers = #tpu.dot_dimension_numbers<[1], [0], [0], [1], [0, 0, 1, 1], [], []>} : vector<1x32xf32>, vector<32x10xf32>, vector<1x10xf32> -> vector<1x10xf32>
    %c0_64 = arith.constant 0 : index
    %c0_65 = arith.constant 0 : index
    %73 = vector.load %arg17[%c0_64, %c0_65] : memref<1x10xf32, #tpu.memory_space<vmem>>, vector<1x10xf32>
    %74 = arith.addf %72, %73 : vector<1x10xf32>
    %c0_66 = arith.constant 0 : index
    %c0_67 = arith.constant 0 : index
    %c0_68 = arith.constant 0 : index
    %75 = vector.load %arg18[%c0_66, %c0_67, %c0_68] : memref<1x1x10xf32, #tpu.memory_space<vmem>>, vector<1x1x10xf32>
    %76 = vector.shape_cast %75 : vector<1x1x10xf32> to vector<1x10xf32>
    %77 = vector.shape_cast %74 : vector<1x10xf32> to vector<1x1x10xf32>
    tpu.vector_store %arg18[%c0_66, %c0_67, %c0_68], %77 {strides = array<i32>} : memref<1x1x10xf32, #tpu.memory_space<vmem>>, vector<1x1x10xf32>,
    return
  }
  func.func @transform_0(%arg0: i32) -> (i32, i32, i32) {
    %c0_i32 = arith.constant 0 : i32
    %c0_i32_0 = arith.constant 0 : i32
    %c0_i32_1 = arith.constant 0 : i32
    return %arg0, %c0_i32, %c0_i32_0 : i32, i32, i32
  }
  func.func @transform_1(%arg0: i32) -> (i32, i32, i32) {
    %c0_i32 = arith.constant 0 : i32
    %c0_i32_0 = arith.constant 0 : i32
    %c0_i32_1 = arith.constant 0 : i32
    %c0_i32_2 = arith.constant 0 : i32
    return %c0_i32, %c0_i32_0, %c0_i32_1 : i32, i32, i32
  }
  func.func @transform_2(%arg0: i32) -> (i32, i32) {
    %c0_i32 = arith.constant 0 : i32
    %c0_i32_0 = arith.constant 0 : i32
    %c0_i32_1 = arith.constant 0 : i32
    return %c0_i32, %c0_i32_0 : i32, i32
  }
  func.func @transform_3(%arg0: i32) -> (i32, i32) {
    %c0_i32 = arith.constant 0 : i32
    %c0_i32_0 = arith.constant 0 : i32
    %c0_i32_1 = arith.constant 0 : i32
    return %c0_i32, %c0_i32_0 : i32, i32
  }
  func.func @transform_4(%arg0: i32) -> (i32, i32) {
    %c0_i32 = arith.constant 0 : i32
    %c0_i32_0 = arith.constant 0 : i32
    %c0_i32_1 = arith.constant 0 : i32
    return %c0_i32, %c0_i32_0 : i32, i32
  }
  func.func @transform_5(%arg0: i32) -> (i32, i32) {
    %c0_i32 = arith.constant 0 : i32
    %c0_i32_0 = arith.constant 0 : i32
    %c0_i32_1 = arith.constant 0 : i32
    return %c0_i32, %c0_i32_0 : i32, i32
  }
  func.func @transform_6(%arg0: i32) -> (i32, i32) {
    %c0_i32 = arith.constant 0 : i32
    %c0_i32_0 = arith.constant 0 : i32
    %c0_i32_1 = arith.constant 0 : i32
    return %c0_i32, %c0_i32_0 : i32, i32
  }
  func.func @transform_7(%arg0: i32) -> (i32, i32, i32) {
    %c0_i32 = arith.constant 0 : i32
    %c0_i32_0 = arith.constant 0 : i32
    %c0_i32_1 = arith.constant 0 : i32
    %c0_i32_2 = arith.constant 0 : i32
    return %c0_i32, %c0_i32_0, %c0_i32_1 : i32, i32, i32
  }
  func.func @transform_8(%arg0: i32) -> (i32, i32) {
    %c0_i32 = arith.constant 0 : i32
    %c0_i32_0 = arith.constant 0 : i32
    %c0_i32_1 = arith.constant 0 : i32
    return %c0_i32, %c0_i32_0 : i32, i32
  }
  func.func @transform_9(%arg0: i32) -> (i32, i32) {
    %c0_i32 = arith.constant 0 : i32
    %c0_i32_0 = arith.constant 0 : i32
    %c0_i32_1 = arith.constant 0 : i32
    return %c0_i32, %c0_i32_0 : i32, i32
  }
  func.func @transform_10(%arg0: i32) -> (i32, i32) {
    %c0_i32 = arith.constant 0 : i32
    %c0_i32_0 = arith.constant 0 : i32
    %c0_i32_1 = arith.constant 0 : i32
    return %c0_i32, %c0_i32_0 : i32, i32
  }
  func.func @transform_11(%arg0: i32) -> (i32, i32) {
    %c0_i32 = arith.constant 0 : i32
    %c0_i32_0 = arith.constant 0 : i32
    %c0_i32_1 = arith.constant 0 : i32
    return %c0_i32, %c0_i32_0 : i32, i32
  }
  func.func @transform_12(%arg0: i32) -> (i32, i32) {
    %c0_i32 = arith.constant 0 : i32
    %c0_i32_0 = arith.constant 0 : i32
    %c0_i32_1 = arith.constant 0 : i32
    return %c0_i32, %c0_i32_0 : i32, i32
  }
  func.func @transform_13(%arg0: i32) -> (i32, i32) {
    %c0_i32 = arith.constant 0 : i32
    %c0_i32_0 = arith.constant 0 : i32
    %c0_i32_1 = arith.constant 0 : i32
    return %c0_i32, %c0_i32_0 : i32, i32
  }
  func.func @transform_14(%arg0: i32) -> (i32, i32) {
    %c0_i32 = arith.constant 0 : i32
    %c0_i32_0 = arith.constant 0 : i32
    %c0_i32_1 = arith.constant 0 : i32
    return %c0_i32, %c0_i32_0 : i32, i32
  }
  func.func @transform_15(%arg0: i32) -> (i32, i32) {
    %c0_i32 = arith.constant 0 : i32
    %c0_i32_0 = arith.constant 0 : i32
    %c0_i32_1 = arith.constant 0 : i32
    return %c0_i32, %c0_i32_0 : i32, i32
  }
  func.func @transform_16(%arg0: i32) -> (i32, i32) {
    %c0_i32 = arith.constant 0 : i32
    %c0_i32_0 = arith.constant 0 : i32
    %c0_i32_1 = arith.constant 0 : i32
    return %c0_i32, %c0_i32_0 : i32, i32
  }
  func.func @transform_17(%arg0: i32) -> (i32, i32, i32) {
    %c0_i32 = arith.constant 0 : i32
    %c0_i32_0 = arith.constant 0 : i32
    %c0_i32_1 = arith.constant 0 : i32
    return %arg0, %c0_i32, %c0_i32_0 : i32, i32, i32
  }
}

</mosaic_0001>

<bundles_post_ra>
// kernel: cnn_forward.1
= control target key start
LH: loop header
LB: loop body
LE: loop exit
PB: predicated region body
PF: predicated region fallthrough
CT: control target
= control target key end

     0   :  { %s4219_s0 = inlined_call_operand.vmem [shape: f32[2,16,48], index: 0, kind: input, shape index: {}]   ;;  %s4220_s1 = inlined_call_operand.vmem [shape: f32[3,48,112], index: 1, kind: input, shape index: {}]   ;;  %s4221_s2 = inlined_call_operand.hbm [shape: f32[1,112], index: 2, kind: input, shape index: {}]   ;;  %s4222_s3 = inlined_call_operand.hbm [shape: f32[112,56], index: 3, kind: input, shape index: {}]   ;;  %s4223_s4 = inlined_call_operand.hbm [shape: f32[112,56], index: 4, kind: input, shape index: {}]   ;;  %s4224_s5 = inlined_call_operand.hbm [shape: f32[7,14], index: 5, kind: input, shape index: {}]   ;;  %s4225_s6 = inlined_call_operand.hbm [shape: f32[7,14], index: 6, kind: input, shape index: {}]   ;;  %s4226_s7 = inlined_call_operand.vmem [shape: f32[3,56,40], index: 7, kind: input, shape index: {}]   ;;  %s4227_s8 = inlined_call_operand.hbm [shape: f32[1,40], index: 8, kind: input, shape index: {}]   ;;  %s4228_s9 = inlined_call_operand.hbm [shape: f32[40,16], index: 9, kind: input, shape index: {}]   ;;  %s4229_s10 = inlined_call_operand.vmem [shape: f32[40,16], index: 10, kind: input, shape index: {}]   ;;  %s4230_s11 = inlined_call_operand.hbm [shape: f32[2,5], index: 11, kind: input, shape index: {}]   ;;  %s4231_s12 = inlined_call_operand.hbm [shape: f32[2,5], index: 12, kind: input, shape index: {}]   ;;  %s4232_s13 = inlined_call_operand.hbm [shape: f32[32,32], index: 13, kind: input, shape index: {}]   ;;  %s4233_s14 = inlined_call_operand.hbm [shape: f32[1,32], index: 14, kind: input, shape index: {}]   ;;  %s4234_s15 = inlined_call_operand.vmem [shape: f32[32,10], index: 15, kind: input, shape index: {}]   ;;  %s4235_s16 = inlined_call_operand.hbm [shape: f32[1,10], index: 16, kind: input, shape index: {}]   ;;  %s4236_s17 = inlined_call_operand.hbm [shape: f32[2,1,10], index: 17, kind: output, shape index: {}]  }
   0x1   :  { %4255 = sst [smem:[#allocation39_spill]] %s4219_s0 }
   0x2   :  { %4256 = sst [smem:[#allocation40_spill]] %s4220_s1 }
   0x3   :  { %4257 = sst [smem:[#allocation41_spill]] %s4222_s3 }
   0x4   :  { %4258 = sst [smem:[#allocation42_spill]] %s4229_s10 }
   0x5   :  { %4259 = sst [smem:[#allocation43_spill]] %s4234_s15 }
   0x6   :  { %4260 = sst [smem:[#allocation44_spill]] %s4236_s17 }
   0x7   :  { %22 = vsyncpa [#allocation3], 0 }
   0x8   :  { %23 = vsyncpa [#allocation6], 0 }
   0x9   :  { %24 = vsyncpa [#allocation9], 0 }
   0xa   :  { %25 = vsyncpa [#allocation12], 0 }
   0xb   :  { %26 = vsyncpa [#allocation15], 0 }
   0xc   :  { %27 = vsyncpa [#allocation18], 0 }
   0xd   :  { %28 = vsyncpa [#allocation21], 0 }
   0xe   :  { %29 = vsyncpa [#allocation4], 0 }
   0xf   :  { %31 = vsyncpa [#allocation4 + $0x1], 0  ;;  %s3606_s24 = smov 0   ;;  %s3608_s25 = smov 0  }
  0x10   :  { %s3610_s26 = smov 0   ;;  %s3612_s27 = smov 0  }
  0x11 LB: > { %4261 = sst [smem:[#allocation31_spill]] %s3483_s24  ;;  %s3627_s28 = sadd.s32 4294967295, %s3495_s27   ;;  %s3495_s27 = sphi %s3612_s27, %s4303_s27   ;;  %s3491_s26 = sphi %s3610_s26, %s4306_s26   ;;  %s3487_s25 = sphi %s3608_s25, %s4305_s25   ;;  %s3483_s24 = sphi %s3606_s24, %s4304_s24  }
  0x12   : > { %4262 = sst [smem:[#allocation32_spill]] %s3487_s25  ;;  %s2311_s29 = sadd.s32 4294967294, %s3495_s27  }
  0x13   : > { %4263 = sst [smem:[#allocation33_spill]] %s3491_s26  ;;  %s3631_s0 = sadd.s32 1, %s3495_s27  }
  0x14   : > { %4264 = sst [smem:[#allocation34_spill]] %s3495_s27  ;;  %s406_s30 = sadd.s32 1, %s3491_s26 }
  0x15   : > { %4265 = sst [smem:[#allocation35_spill]] %s3631_s0  ;;  %s403_s18 = ssub.s32 %s3495_s27, %s3631_s0 }
  0x16   : > { %p416_p0 = scmp.ne.s32.totalorder %s3491_s26, %s3487_s25  ;;  %p404_p1 = scmp.eq.s32.totalorder %s403_s18, 0 }
  0x17   : > { %p417_p2 = scmp.eq.s32.totalorder %s3627_s28, 1  ;;  %p422_p3 = scmp.ne.s32.totalorder %s3487_s25, %s3483_s24 }
  0x18   : > { %p423_p4 = scmp.eq.s32.totalorder %s2311_s29, 1  ;;  %p2312_p7 = scmp.ge.s32.totalorder %s3495_s27, 1 }
  0x19   : > { %s3642_s19 = scalar_select %p404_p1, %s3491_s26, %s406_s30  }
  0x1a   : > { %p3644_p5 = por %p417_p2, %p416_p0  ;;  %p3648_p6 = por %p423_p4, %p422_p3 }
  0x1b   : > { %4266 = sst [smem:[#allocation36_spill]] %s3642_s19  ;;  %p430_p8 = scmp.lt.s32.totalorder %s3495_s27, 3 }
  0x1c   : > { %s4267_s1 = scalar_select %p3644_p5, 1, 0 }
  0x1d   : > { %s4269_s20 = scalar_select %p3648_p6, 1, 0 }
  0x1e   : > { %4268 = sst [smem:[#allocation37_spill]] %s4267_s1  ;;  %p4245_p9 = scmp.eq.s32.totalorder %s3627_s28, 0 }
  0x1f   : > { %4270 = sst [smem:[#allocation38_spill]] %s4269_s20  ;;  %p3655_p10 = pnand %p2312_p7, %p430_p8 }
  0x20   : > { %s3497_s22 = smov [#allocation5]   ;;  %s3498_s30 = smov [#allocation8]  }
  0x21   : > { %s4271_s21 = scalar_select %p3655_p10, 1, 0 }
  0x22   : > { %s456_s23 = sshll.u32 %s3497_s22, 4  ;;  %p2953_p11 = pneg %p3655_p10  ;;  %s3661_s23 = int_to_ptr.vmem [resolvable:$true] %s456_s23 }
  0x23   : > { %s483_s18 = sshll.u32 %s3498_s30, 4  ;;  %s3499_s19 = smov [#allocation11]   ;;  %s3669_s18 = int_to_ptr.vmem [resolvable:$true] %s483_s18 }
  0x24   : > { %p3665_p12 = pnand %p4245_p9, %p2953_p11  ;;  %s3671_s26 = sshll.u32 %s3499_s19, 4  ;;  %s509_s26 = int_to_ptr.vmem [resolvable:$true] %s3671_s26 }
  0x25   : > { %s4273_s3 = sld [smem:[#allocation41_spill]] }
  0x26   : > { %p3681_p0 = pneg %p3665_p12 }
  0x2b   : > { %s3069_s22 = scalar_lea.hbm %s4273_s3, 1792 }
  0x2c   : > { %p3070_p13 = scmp.ne.s32.totalorder %s4273_s3, %s3069_s22  ;;  %p3076_p3 = scmp.lt.u32.totalorder %s3069_s22, %s4273_s3 }
  0x2e   : > { %p3072_p1 = pnand %p3681_p0, %p3070_p13 }
  0x30   : > { %p3073_p2 = pneg %p3072_p1 }
  0x32   : > { %p3078_p4 = pnand %p3076_p3, %p3073_p2 }
  0x34   : > { %3081 = shalt.err (!%p3078_p4)
}
  0x35   : > { %s3082_s24 = scalar_lea.vmem %s3661_s23, 1792  ;;  %p3090_p9 = scmp.lt.s32.totalorder %s3661_s23, %s3661_s23 }
  0x36   : > { %p3083_p7 = scmp.ne.s32.totalorder %s3661_s23, %s3082_s24  ;;  %p3091_p6 = scmp.lt.s32.totalorder %s3082_s24, %s3082_s24 }
  0x38   : > { %p3085_p8 = pnand %p3083_p7, %p3681_p0  ;;  %p3092_p13 = por %p3091_p6, %p3090_p9 }
  0x3a   : > { %p3086_p11 = pneg %p3085_p8 }
  0x3c   : > { %p3093_p1 = pnand %p3092_p13, %p3086_p11 }
  0x3e   : > { %3096 = shalt.err (!%p3093_p1)
}
  0x3f   : > { %s4253_s27 = smov 128   ;;  %s3501_s0 = smov 8  }
  0x40   : > { %2959 = dma.hbm_to_vmem [thread:$0]  (!%p3665_p12), %s4273_s3, 1792, %s3661_s23, [#allocation6], %s4253_s27, %s4253_s27, %s3501_s0  }
  0x41   : > { %s3097_s24 = scalar_lea.hbm %s4224_s5, 128 }
  0x42   : > { %p3098_p6 = scmp.ne.s32.totalorder %s4224_s5, %s3097_s24  ;;  %p3104_p3 = scmp.lt.u32.totalorder %s3097_s24, %s4224_s5 }
  0x44   : > { %p3100_p9 = pnand %p3098_p6, %p3681_p0 }
  0x46   : > { %p3101_p2 = pneg %p3100_p9 }
  0x48   : > { %p3106_p4 = pnand %p3104_p3, %p3101_p2 }
  0x4a   : > { %3109 = shalt.err (!%p3106_p4)
}
  0x4b   : > { %s3110_s23 = scalar_lea.vmem %s3669_s18, 128  ;;  %p3118_p13 = scmp.lt.s32.totalorder %s3669_s18, %s3669_s18 }
  0x4c   : > { %p3111_p7 = scmp.ne.s32.totalorder %s3669_s18, %s3110_s23  ;;  %p3119_p1 = scmp.lt.s32.totalorder %s3110_s23, %s3110_s23 }
  0x4e   : > { %p3113_p8 = pnand %p3111_p7, %p3681_p0  ;;  %p3120_p6 = por %p3119_p1, %p3118_p13 }
  0x50   : > { %p3114_p11 = pneg %p3113_p8 }
  0x52   : > { %p3121_p9 = pnand %p3120_p6, %p3114_p11 }
  0x54   : > { %3124 = shalt.err (!%p3121_p9)
}
  0x55   : > { %2965 = dma.hbm_to_vmem [thread:$0]  (!%p3665_p12), %s4224_s5, 128, %s3669_s18, [#allocation9]  }
  0x56   : > { %s3125_s20 = scalar_lea.hbm %s4227_s8, 16 }
  0x57   : > { %p3126_p2 = scmp.ne.s32.totalorder %s4227_s8, %s3125_s20  ;;  %p3132_p7 = scmp.lt.u32.totalorder %s3125_s20, %s4227_s8 }
  0x59   : > { %p3128_p3 = pnand %p3126_p2, %p3681_p0 }
  0x5b   : > { %p3129_p4 = pneg %p3128_p3 }
  0x5d   : > { %p3134_p8 = pnand %p3132_p7, %p3129_p4 }
  0x5f   : > { %3137 = shalt.err (!%p3134_p8)
}
  0x60   : > { %s3138_s23 = scalar_lea.vmem %s509_s26, 16  ;;  %s3145_s18 = scalar_lea.vmem %s509_s26, 32 }
  0x61   : > { %p3139_p11 = scmp.ne.s32.totalorder %s509_s26, %s3138_s23  ;;  %p3146_p6 = scmp.lt.s32.totalorder %s509_s26, %s509_s26 }
  0x62   : > { %p3147_p9 = scmp.lt.s32.totalorder %s3145_s18, %s3138_s23 }
  0x63   : > { %p3141_p13 = pnand %p3139_p11, %p3681_p0 }
  0x64   : > { %p3148_p5 = por %p3147_p9, %p3146_p6 }
  0x65   : > { %p3142_p1 = pneg %p3141_p13 }
  0x67   : > { %p3149_p10 = pnand %p3148_p5, %p3142_p1 }
  0x69   : > { %3152 = shalt.err (!%p3149_p10)
}
  0x6a   : > { %2971 = dma.hbm_to_vmem [thread:$0]  (!%p3665_p12), %s4227_s8, 16, %s509_s26, [#allocation12]  }
  0x6b   : > { %s3502_s25 = smov [#allocation14]   ;;  %s3503_s20 = smov [#allocation17]  }
  0x6c   : > { %s535_s1 = sshll.u32 %s3502_s25, 4  ;;  %s556_s22 = sshll.u32 %s3503_s20, 4  ;;  %s536_s1 = int_to_ptr.vmem [resolvable:$true] %s535_s1  ;;  %s557_s22 = int_to_ptr.vmem [resolvable:$true] %s556_s22 }
  0x6d   : > { %s3153_s24 = scalar_lea.hbm %s4230_s11, 32 }
  0x6e   : > { %p3154_p5 = scmp.ne.s32.totalorder %s4230_s11, %s3153_s24  ;;  %p3160_p3 = scmp.lt.u32.totalorder %s3153_s24, %s4230_s11 }
  0x70   : > { %p3156_p10 = pnand %p3154_p5, %p3681_p0 }
  0x72   : > { %p3157_p2 = pneg %p3156_p10 }
  0x74   : > { %p3162_p4 = pnand %p3160_p3, %p3157_p2 }
  0x76   : > { %3165 = shalt.err (!%p3162_p4)
}
  0x77   : > { %s3166_s26 = scalar_lea.vmem %s536_s1, 32  ;;  %p3174_p13 = scmp.lt.s32.totalorder %s536_s1, %s536_s1 }
  0x78   : > { %p3167_p7 = scmp.ne.s32.totalorder %s536_s1, %s3166_s26  ;;  %p3175_p1 = scmp.lt.s32.totalorder %s3166_s26, %s3166_s26 }
  0x7a   : > { %p3169_p8 = pnand %p3167_p7, %p3681_p0  ;;  %p3176_p6 = por %p3175_p1, %p3174_p13 }
  0x7c   : > { %p3170_p11 = pneg %p3169_p8 }
  0x7e   : > { %p3177_p9 = pnand %p3176_p6, %p3170_p11 }
  0x80   : > { %3180 = shalt.err (!%p3177_p9)
}
  0x81   : > { %2977 = dma.hbm_to_vmem [thread:$0]  (!%p3665_p12), %s4230_s11, 32, %s536_s1, [#allocation15]  }
  0x82   : > { %s3181_s30 = scalar_lea.hbm %s4232_s13, 512 }
  0x83   : > { %p3182_p5 = scmp.ne.s32.totalorder %s4232_s13, %s3181_s30  ;;  %p3188_p3 = scmp.lt.u32.totalorder %s3181_s30, %s4232_s13 }
  0x85   : > { %p3184_p10 = pnand %p3182_p5, %p3681_p0 }
  0x87   : > { %p3185_p2 = pneg %p3184_p10 }
  0x89   : > { %p3190_p4 = pnand %p3188_p3, %p3185_p2 }
  0x8b   : > { %3193 = shalt.err (!%p3190_p4)
}
  0x8c   : > { %s3194_s10 = scalar_lea.vmem %s557_s22, 512  ;;  %p3202_p13 = scmp.lt.s32.totalorder %s557_s22, %s557_s22 }
  0x8d   : > { %p3195_p7 = scmp.ne.s32.totalorder %s557_s22, %s3194_s10  ;;  %p3203_p1 = scmp.lt.s32.totalorder %s3194_s10, %s3194_s10 }
  0x8f   : > { %p3197_p8 = pnand %p3195_p7, %p3681_p0  ;;  %p3204_p6 = por %p3203_p1, %p3202_p13 }
  0x91   : > { %p3198_p11 = pneg %p3197_p8 }
  0x93   : > { %p3205_p9 = pnand %p3204_p6, %p3198_p11 }
  0x95   : > { %3208 = shalt.err (!%p3205_p9)
}
  0x96   : > { %s4275_s1 = smov 128   ;;  %s3504_s25 = smov [#allocation2]  }
  0x97   : > { %2983 = dma.hbm_to_vmem [thread:$0]  (!%p3665_p12), %s4232_s13, 512, %s557_s22, [#allocation18], %s4275_s1, %s4275_s1, %s3501_s0  }
  0x98   : > { %s446_s27 = sshll.u32 %s3504_s25, 4  ;;  %s3505_s20 = smov [#allocation7]   ;;  %s447_s27 = int_to_ptr.vmem [resolvable:$true] %s446_s27 }
  0x99   : > { %s469_s30 = sshll.u32 %s3505_s20, 4  ;;  %s3209_s23 = scalar_lea.hbm %s4221_s2, 16  ;;  %s470_s30 = int_to_ptr.vmem [resolvable:$true] %s469_s30 }
  0x9a   : > { %p3210_p5 = scmp.ne.s32.totalorder %s4221_s2, %s3209_s23  ;;  %p3216_p3 = scmp.lt.u32.totalorder %s3209_s23, %s4221_s2 }
  0x9c   : > { %p3212_p10 = pnand %p3210_p5, %p3681_p0 }
  0x9e   : > { %p3213_p2 = pneg %p3212_p10 }
  0xa0   : > { %p3218_p4 = pnand %p3216_p3, %p3213_p2 }
  0xa2   : > { %3221 = shalt.err (!%p3218_p4)
}
  0xa3   : > { %s3222_s22 = scalar_lea.vmem %s447_s27, 16  ;;  %s3229_s15 = scalar_lea.vmem %s447_s27, 32 }
  0xa4   : > { %p3223_p7 = scmp.ne.s32.totalorder %s447_s27, %s3222_s22  ;;  %p3230_p13 = scmp.lt.s32.totalorder %s447_s27, %s447_s27 }
  0xa5   : > { %p3231_p1 = scmp.lt.s32.totalorder %s3229_s15, %s3222_s22 }
  0xa6   : > { %p3225_p8 = pnand %p3223_p7, %p3681_p0 }
  0xa7   : > { %p3232_p6 = por %p3231_p1, %p3230_p13 }
  0xa8   : > { %p3226_p11 = pneg %p3225_p8 }
  0xaa   : > { %p3233_p9 = pnand %p3232_p6, %p3226_p11 }
  0xac   : > { %3236 = shalt.err (!%p3233_p9)
}
  0xad   : > { %2956 = dma.hbm_to_vmem [thread:$0]  (!%p3665_p12), %s4221_s2, 16, %s447_s27, [#allocation3]  }
  0xae   : > { %s3237_s24 = scalar_lea.hbm %s4223_s4, 1792 }
  0xaf   : > { %p3238_p5 = scmp.ne.s32.totalorder %s4223_s4, %s3237_s24  ;;  %p3244_p3 = scmp.lt.u32.totalorder %s3237_s24, %s4223_s4 }
  0xb1   : > { %p3240_p10 = pnand %p3238_p5, %p3681_p0 }
  0xb3   : > { %p3241_p2 = pneg %p3240_p10 }
  0xb5   : > { %p3246_p4 = pnand %p3244_p3, %p3241_p2 }
  0xb7   : > { %3249 = shalt.err (!%p3246_p4)
}
  0xb8   : > { %s3250_s22 = scalar_lea.vmem %s470_s30, 1792  ;;  %p3258_p13 = scmp.lt.s32.totalorder %s470_s30, %s470_s30 }
  0xb9   : > { %p3251_p7 = scmp.ne.s32.totalorder %s470_s30, %s3250_s22  ;;  %p3259_p1 = scmp.lt.s32.totalorder %s3250_s22, %s3250_s22 }
  0xbb   : > { %p3253_p8 = pnand %p3251_p7, %p3681_p0  ;;  %p3260_p6 = por %p3259_p1, %p3258_p13 }
  0xbd   : > { %p3254_p11 = pneg %p3253_p8 }
  0xbf   : > { %p3261_p9 = pnand %p3260_p6, %p3254_p11 }
  0xc1   : > { %3264 = shalt.err (!%p3261_p9)
}
  0xc2   : > { %2962 = dma.hbm_to_vmem [thread:$0]  (!%p3665_p12), %s4223_s4, 1792, %s470_s30, [#allocation6], %s4275_s1, %s4275_s1, %s3501_s0  }
  0xc3   : > { %s3506_s25 = smov [#allocation10]   ;;  %s3507_s3 = smov [#allocation13]  }
  0xc4   : > { %s494_s20 = sshll.u32 %s3506_s25, 4  ;;  %s518_s19 = sshll.u32 %s3507_s3, 4  ;;  %s495_s20 = int_to_ptr.vmem [resolvable:$true] %s494_s20  ;;  %s519_s19 = int_to_ptr.vmem [resolvable:$true] %s518_s19 }
  0xc5   : > { %s3265_s18 = scalar_lea.hbm %s4225_s6, 128 }
  0xc6   : > { %p3266_p5 = scmp.ne.s32.totalorder %s4225_s6, %s3265_s18  ;;  %p3272_p3 = scmp.lt.u32.totalorder %s3265_s18, %s4225_s6 }
  0xc8   : > { %p3268_p10 = pnand %p3266_p5, %p3681_p0 }
  0xca   : > { %p3269_p2 = pneg %p3268_p10 }
  0xcc   : > { %p3274_p4 = pnand %p3272_p3, %p3269_p2 }
  0xce   : > { %3277 = shalt.err (!%p3274_p4)
}
  0xcf   : > { %s3278_s30 = scalar_lea.vmem %s495_s20, 128  ;;  %p3286_p13 = scmp.lt.s32.totalorder %s495_s20, %s495_s20 }
  0xd0   : > { %p3279_p7 = scmp.ne.s32.totalorder %s495_s20, %s3278_s30  ;;  %p3287_p1 = scmp.lt.s32.totalorder %s3278_s30, %s3278_s30 }
  0xd2   : > { %p3281_p8 = pnand %p3279_p7, %p3681_p0  ;;  %p3288_p6 = por %p3287_p1, %p3286_p13 }
  0xd4   : > { %p3282_p11 = pneg %p3281_p8 }
  0xd6   : > { %p3289_p9 = pnand %p3288_p6, %p3282_p11 }
  0xd8   : > { %3292 = shalt.err (!%p3289_p9)
}
  0xd9   : > { %2968 = dma.hbm_to_vmem [thread:$0]  (!%p3665_p12), %s4225_s6, 128, %s495_s20, [#allocation9]  }
  0xda   : > { %s3293_s23 = scalar_lea.hbm %s4228_s9, 640 }
  0xdb   : > { %p3294_p5 = scmp.ne.s32.totalorder %s4228_s9, %s3293_s23  ;;  %p3300_p3 = scmp.lt.u32.totalorder %s3293_s23, %s4228_s9 }
  0xdd   : > { %p3296_p10 = pnand %p3294_p5, %p3681_p0 }
  0xdf   : > { %p3297_p2 = pneg %p3296_p10 }
  0xe1   : > { %p3302_p4 = pnand %p3300_p3, %p3297_p2 }
  0xe3   : > { %3305 = shalt.err (!%p3302_p4)
}
  0xe4   : > { %s3306_s27 = scalar_lea.vmem %s519_s19, 640  ;;  %p3314_p13 = scmp.lt.s32.totalorder %s519_s19, %s519_s19 }
  0xe5   : > { %p3307_p7 = scmp.ne.s32.totalorder %s519_s19, %s3306_s27  ;;  %p3315_p1 = scmp.lt.s32.totalorder %s3306_s27, %s3306_s27 }
  0xe7   : > { %p3309_p8 = pnand %p3307_p7, %p3681_p0  ;;  %p3316_p6 = por %p3315_p1, %p3314_p13 }
  0xe9   : > { %p3310_p11 = pneg %p3309_p8 }
  0xeb   : > { %p3317_p9 = pnand %p3316_p6, %p3310_p11 }
  0xed   : > { %3320 = shalt.err (!%p3317_p9)
}
  0xee   : > { %2974 = dma.hbm_to_vmem [thread:$0]  (!%p3665_p12), %s4228_s9, 640, %s519_s19, [#allocation12], %s4275_s1, %s4275_s1, %s3501_s0  }
  0xef   : > { %s3508_s15 = smov [#allocation16]   ;;  %s3509_s3 = smov [#allocation19]  }
  0xf0   : > { %s546_s25 = sshll.u32 %s3508_s15, 4  ;;  %s570_s24 = sshll.u32 %s3509_s3, 4  ;;  %s547_s25 = int_to_ptr.vmem [resolvable:$true] %s546_s25  ;;  %s571_s24 = int_to_ptr.vmem [resolvable:$true] %s570_s24 }
  0xf1   : > { %s3321_s10 = scalar_lea.hbm %s4231_s12, 32 }
  0xf2   : > { %p3322_p5 = scmp.ne.s32.totalorder %s4231_s12, %s3321_s10  ;;  %p3328_p3 = scmp.lt.u32.totalorder %s3321_s10, %s4231_s12 }
  0xf4   : > { %p3324_p10 = pnand %p3322_p5, %p3681_p0 }
  0xf6   : > { %p3325_p2 = pneg %p3324_p10 }
  0xf8   : > { %p3330_p4 = pnand %p3328_p3, %p3325_p2 }
  0xfa   : > { %3333 = shalt.err (!%p3330_p4)
}
  0xfb   : > { %s3334_s0 = scalar_lea.vmem %s547_s25, 32  ;;  %p3342_p13 = scmp.lt.s32.totalorder %s547_s25, %s547_s25 }
  0xfc   : > { %p3335_p7 = scmp.ne.s32.totalorder %s547_s25, %s3334_s0  ;;  %p3343_p1 = scmp.lt.s32.totalorder %s3334_s0, %s3334_s0 }
  0xfe   : > { %p3337_p8 = pnand %p3335_p7, %p3681_p0  ;;  %p3344_p6 = por %p3343_p1, %p3342_p13 }
 0x100   : > { %p3338_p11 = pneg %p3337_p8 }
 0x102   : > { %p3345_p9 = pnand %p3344_p6, %p3338_p11 }
 0x104   : > { %3348 = shalt.err (!%p3345_p9)
}
 0x105   : > { %2980 = dma.hbm_to_vmem [thread:$0]  (!%p3665_p12), %s4231_s12, 32, %s547_s25, [#allocation15]  }
 0x106   : > { %s3349_s3 = scalar_lea.hbm %s4233_s14, 16 }
 0x107   : > { %p3350_p5 = scmp.ne.s32.totalorder %s4233_s14, %s3349_s3  ;;  %p3356_p3 = scmp.lt.u32.totalorder %s3349_s3, %s4233_s14 }
 0x109   : > { %p3352_p10 = pnand %p3350_p5, %p3681_p0 }
 0x10b   : > { %p3353_p2 = pneg %p3352_p10 }
 0x10d   : > { %p3358_p4 = pnand %p3356_p3, %p3353_p2 }
 0x10f   : > { %3361 = shalt.err (!%p3358_p4)
}
 0x110   : > { %s3362_s22 = scalar_lea.vmem %s571_s24, 16  ;;  %s3369_s25 = scalar_lea.vmem %s571_s24, 32 }
 0x111   : > { %p3363_p7 = scmp.ne.s32.totalorder %s571_s24, %s3362_s22  ;;  %p3370_p13 = scmp.lt.s32.totalorder %s571_s24, %s571_s24 }
 0x112   : > { %p3371_p1 = scmp.lt.s32.totalorder %s3369_s25, %s3362_s22 }
 0x113   : > { %p3365_p8 = pnand %p3363_p7, %p3681_p0 }
 0x114   : > { %p3372_p6 = por %p3371_p1, %p3370_p13 }
 0x115   : > { %p3366_p11 = pneg %p3365_p8 }
 0x117   : > { %p3373_p9 = pnand %p3372_p6, %p3366_p11 }
 0x119   : > { %3376 = shalt.err (!%p3373_p9)
}
 0x11a   : > { %2986 = dma.hbm_to_vmem [thread:$0]  (!%p3665_p12), %s4233_s14, 16, %s571_s24, [#allocation18]  }
 0x11b   : > { %s3510_s0 = smov [#allocation20]   ;;  %s3377_s15 = scalar_lea.hbm %s4235_s16, 16 }
 0x11c   : > { %s584_s1 = sshll.u32 %s3510_s0, 4  ;;  %p3378_p5 = scmp.ne.s32.totalorder %s4235_s16, %s3377_s15  ;;  %s585_s1 = int_to_ptr.vmem [resolvable:$true] %s584_s1 }
 0x11d   : > { %p3384_p3 = scmp.lt.u32.totalorder %s3377_s15, %s4235_s16 }
 0x11e   : > { %p3380_p10 = pnand %p3378_p5, %p3681_p0 }
 0x120   : > { %p3381_p2 = pneg %p3380_p10 }
 0x122   : > { %p3386_p4 = pnand %p3384_p3, %p3381_p2 }
 0x124   : > { %3389 = shalt.err (!%p3386_p4)
}
 0x125   : > { %s3390_s24 = scalar_lea.vmem %s585_s1, 16  ;;  %s3397_s26 = scalar_lea.vmem %s585_s1, 32 }
 0x126   : > { %p3391_p7 = scmp.ne.s32.totalorder %s585_s1, %s3390_s24  ;;  %p3398_p13 = scmp.lt.s32.totalorder %s585_s1, %s585_s1 }
 0x127   : > { %p3399_p1 = scmp.lt.s32.totalorder %s3397_s26, %s3390_s24 }
 0x128   : > { %p3393_p8 = pnand %p3391_p7, %p3681_p0 }
 0x129   : > { %p3400_p6 = por %p3399_p1, %p3398_p13 }
 0x12a   : > { %p3394_p11 = pneg %p3393_p8 }
 0x12c   : > { %p3401_p9 = pnand %p3400_p6, %p3394_p11 }
 0x12e   : > { %3404 = shalt.err (!%p3401_p9)
}
 0x12f   : > { %2989 = dma.hbm_to_vmem [thread:$0]  (!%p3665_p12), %s4235_s16, 16, %s585_s1, [#allocation21]  }
 0x130   : > { %p4276_p5 = scmp.ne.s32.totalorder %s4271_s21, 0 }
 0x131   : > { %p4277_p10 = scmp.eq.s32.totalorder (!%p4276_p5), %s3627_s28, 0 }
 0x132   : > { %605 = sbr.rel (%p4276_p5) target bundleno = 2178 (0x882), region = 88 }
 0x139   : > { %3450 = dma.done.wait (%p4277_p10), [#allocation3], 16   ;;  %p4278_p0 = pmov %p4277_p10 }
 0x13b   : > { %3452 = vsyncadd (%p4278_p0), [#allocation3], 4294967280  ;;  %p4279_p2 = pmov %p4278_p0 }
 0x13c   : > { %p4280_p3 = pmov %p4278_p0 }
 0x13d   : > { %3454 = dma.done.wait (%p4279_p2), [#allocation6], 3584  }
 0x13e   : > { %3456 = vsyncadd (%p4280_p3), [#allocation6], 4294963712  ;;  %p4281_p4 = pmov %p4278_p0 }
 0x13f   : > { %p4282_p12 = pmov %p4278_p0 }
 0x140   : > { %3458 = dma.done.wait (%p4281_p4), [#allocation9], 256  }
 0x141   : > { %3460 = vsyncadd (%p4282_p12), [#allocation9], 4294967040  ;;  %p4283_p7 = pmov %p4278_p0 }
 0x142   : > { %p4284_p8 = pmov %p4278_p0 }
 0x143   : > { %3462 = dma.done.wait (%p4283_p7), [#allocation12], 656  }
 0x144   : > { %3464 = vsyncadd (%p4284_p8), [#allocation12], 4294966640  ;;  %p4285_p11 = pmov %p4278_p0 }
 0x145   : > { %p4286_p13 = pmov %p4278_p0 }
 0x146   : > { %3466 = dma.done.wait (%p4285_p11), [#allocation15], 64  }
 0x147   : > { %3468 = vsyncadd (%p4286_p13), [#allocation15], 4294967232  ;;  %p4287_p1 = pmov %p4278_p0 }
 0x148   : > { %p4288_p6 = pmov %p4278_p0 }
 0x149   : > { %3470 = dma.done.wait (%p4287_p1), [#allocation18], 528  }
 0x14a   : > { %3472 = vsyncadd (%p4288_p6), [#allocation18], 4294966768  ;;  %p4289_p9 = pmov %p4278_p0 }
 0x14b   : > { %p4290_p5 = pmov %p4278_p0 }
 0x14c   : > { %3474 = dma.done.wait (%p4289_p9), [#allocation21], 16  }
 0x14d   : > { %3476 = vsyncadd (%p4290_p5), [#allocation21], 4294967280  ;;  %p700_p10 = scmp.lt.s32.totalorder %s3627_s28, 1  ;;  %s4291_s20 = sld [smem:[#allocation39_spill]]  ;;  %vm722_vm0 = vcmask 1046528   ;;  %vm726_vm1 = vcmask 392192  }
 0x14e   : > { %s4292_s30 = sld [smem:[#allocation40_spill]]  ;;  %v988_v16 = vld [vmem:[#allocation5] sm:$0xff]  ;;  %v989_v17 = vld [vmem:[#allocation5 + $0x8] sm:$0xff]  ;;  %v990_v18 = vld [vmem:[#allocation5 + $0x10] sm:$0xff]  ;;  %vm892_vm2 = vcmask 1045504   ;;  %vm1002_vm3 = vcmask 916480  }
 0x14f   : > { %s701_s17 = scalar_select %p700_p10, %s3627_s28, 1  ;;  %v991_v19 = vld [vmem:[#allocation5 + $0x18] sm:$0xff]  ;;  %v2781_v20 = vpack.c.bf16 %v989_v17, %v988_v16  ;;  %v992_v25 = vld [vmem:[#allocation5 + $0x20] sm:$0xff]  ;;  %v993_v26 = vld [vmem:[#allocation5 + $0x28] sm:$0xff]  ;;  %vm3512_vm4 = vmmov 0   ;;  %vm3514_vm5 = vmmov 1  }
 0x150   : > { %v2785_v21 = vpack.c.bf16 %v991_v19, %v990_v18  ;;  %v2789_v28 = vpack.c.bf16 %v993_v26, %v992_v25  ;;  %v994_v29 = vld [vmem:[#allocation5 + $0x30] sm:$0xff]  ;;  %v995_v30 = vld [vmem:[#allocation5 + $0x38] sm:$0xff]  ;;  %v996_v35 = vld [vmem:[#allocation5 + $0x40] sm:$0xff]  ;;  %vm1176_vm7 = vcmask 113664   ;;  %vm1345_vm8 = vcmask 457728   ;;  %s4294_s10 = sld [smem:[#allocation43_spill]] }
 0x151   : > { %s2398_s21 = sshll.u32 %s701_s17, 4  ;;  %2782 = vmatprep.subr.bf16.mxu1 %v2781_v20  ;;  %v2793_v33 = vpack.c.bf16 %v995_v30, %v994_v29  ;;  %v997_v36 = vld [vmem:[#allocation5 + $0x48] sm:$0xff]  ;;  %v998_v45 = vld [vmem:[#allocation5 + $0x50] sm:$0xff]  ;;  %v999_v46 = vld [vmem:[#allocation5 + $0x58] sm:$0xff]  ;;  %vm1586_vm9 = vcmask 326656   ;;  %vm1741_vm10 = vcmask 1044480  }
 0x152   : > { %2784 = vmatpush3.bf16.msra.mxu1 %v2781_v20  ;;  %v2797_v39 = vpack.c.bf16 %v997_v36, %v996_v35  ;;  %v2801_v49 = vpack.c.bf16 %v999_v46, %v998_v45  ;;  %v1000_v53 = vld [vmem:[#allocation5 + $0x60] sm:$0xff]  ;;  %v1001_v54 = vld [vmem:[#allocation5 + $0x68] sm:$0xff]  ;;  %v1084_v56 = vld [vmem:[#allocation7] sm:$0xff]  ;;  %v3511_v20 = vmov 0.0|0.0   ;;  %vm1737_vm11 = vcmask 39936   ;;  %s4295_s22 = sld [smem:[#allocation32_spill]] }
 0x153   : > { %s704_s0 = scalar_lea.vmem %s4291_s20, %s2398_s21  ;;  %2786 = vmatprep.subr.bf16.mxu1 %v2785_v21  ;;  %v2805_v55 = vpack.c.bf16 %v1001_v54, %v1000_v53  ;;  %v1085_v57 = vld [vmem:[#allocation7 + $0x8] sm:$0xff]  ;;  %v1096_v17 = vld [vmem:[#allocation7 + $0x60] sm:$0xff]  ;;  %vm2839_vm6 = vmpackc.low %vm892_vm2, %vm3514_vm5  ;;  %s4293_s21 = sld [smem:[#allocation42_spill]]  ;;  %vm1893_vm12 = vcmask 130048   ;;  %vm2050_vm13 = vcmask 261120   ;;  %vm2124_vm14 = vcmask 73728  }
 0x154   : > { %v2341_v0 = vld [vmem:[%s4292_s30 + $0x30] sm:$0xff]  ;;  %v2342_v1 = vld [vmem:[%s4292_s30 + $0x38] sm:$0xff]  ;;  %v2343_v2 = vld [vmem:[%s4292_s30 + $0x40] sm:$0xff]  ;;  %v2809_v58 = vpack.c.bf16 %v1085_v57, %v1084_v56  ;;  %s4296_s20 = sld [smem:[#allocation37_spill]]  ;;  %s2395_s1 = sshll.u32 %s3627_s28, 4 }
 0x155   : > { %v2745_v3 = vpack.c.bf16 %v2342_v1, %v2341_v0  ;;  %v2344_v4 = vld [vmem:[%s4292_s30 + $0x48] sm:$0xff]  ;;  %v2345_v5 = vld [vmem:[%s4292_s30 + $0x50] sm:$0xff]  ;;  %v2346_v7 = vld [vmem:[%s4292_s30 + $0x58] sm:$0xff]  ;;  %s4297_s18 = sld [smem:[#allocation44_spill]]  ;;  %s3515_s28 = smov [#allocation22]  }
 0x156   : > { %v2749_v6 = vpack.c.bf16 %v2344_v4, %v2343_v2  ;;  %v3971_v8 = vld [vmem:[%s704_s0] sm:$0xff]  ;;  %v3973_v9 = vld [vmem:[%s704_s0 + $0x8] sm:$0xff]  ;;  %v2753_v12 = vpack.c.bf16 %v2346_v7, %v2345_v5  ;;  %v709_v23 = vld [vmem:[%s4292_s30 + $0x10] sm:$0xff]  ;;  %2788 = vmatpush3.bf16.msra.mxu1 %v2785_v21  ;;  %v3513_v21 = vmov 0.0   ;;  %s3409_s25 = sshll.u32 %s3515_s28, 4  ;;  %s3410_s25 = int_to_ptr.vmem [resolvable:$false] %s3409_s25 }
 0x157   : > { %2746 = vmatprep.subr.bf16.mxu0 %v2745_v3  ;;  %v723_v10 = vrot.slane %v3971_v8, 1  ;;  %v724_v11 = vrot.slane %v3973_v9, 1  ;;  %v707_v14 = vld [vmem:[%s4292_s30] sm:$0xff]  ;;  %v708_v15 = vld [vmem:[%s4292_s30 + $0x8] sm:$0xff]  ;;  %v710_v24 = vld [vmem:[%s4292_s30 + $0x18] sm:$0xff]  ;;  %2790 = vmatprep.subr.bf16.mxu1 %v2789_v28  ;;  %v893_v42 = vrot.slane %v3971_v8, 2 }
 0x158   : > { %2748 = vmatpush3.bf16.msra.mxu0 %v2745_v3  ;;  %v2757_v22 = vpack.c.bf16 %v708_v15, %v707_v14  ;;  %v2761_v27 = vpack.c.bf16 %v710_v24, %v709_v23  ;;  %v711_v31 = vld [vmem:[%s4292_s30 + $0x20] sm:$0xff]  ;;  %v712_v32 = vld [vmem:[%s4292_s30 + $0x28] sm:$0xff]  ;;  %v2353_v41 = vld [vmem:[%s4292_s30 + $0x70] sm:$0xff]  ;;  %v894_v43 = vrot.slane %v3973_v9, 2  ;;  %s698_s0 = sand.u32 1, %s4295_s22   ;;  %s3411_s17 = scalar_lea.vmem %s3410_s25, 32 }
 0x159   : > { %2750 = vmatprep.subr.bf16.mxu0 %v2749_v6  ;;  %v725_v13 = vsel %vm722_vm0, %v723_v10, %v724_v11  ;;  %v2765_v34 = vpack.c.bf16 %v712_v32, %v711_v31  ;;  %v2351_v37 = vld [vmem:[%s4292_s30 + $0x60] sm:$0xff]  ;;  %v2352_v38 = vld [vmem:[%s4292_s30 + $0x68] sm:$0xff]  ;;  %v2354_v44 = vld [vmem:[%s4292_s30 + $0x78] sm:$0xff]  ;;  %s699_s19 = scalar_lea.vmem [#allocation22], %s698_s0  ;;  %s2127_s26 = scalar_lea.sflag [#allocation4], %s698_s0 }
 0x15a   : > { %2524 = vmatprep.mubr.msk.f32.mxu0 %vm726_vm1, %v725_v13  ;;  %2792 = vmatpush3.bf16.msra.mxu1 %v2789_v28  ;;  %v2769_v40 = vpack.c.bf16 %v2352_v38, %v2351_v37  ;;  %v2773_v47 = vpack.c.bf16 %v2354_v44, %v2353_v41  ;;  %v895_v48 = vsel %vm892_vm2, %v893_v42, %v894_v43  ;;  %v2355_v50 = vld [vmem:[%s4292_s30 + $0x80] sm:$0xff]  ;;  %v2356_v51 = vld [vmem:[%s4292_s30 + $0x88] sm:$0xff]  ;;  %v1088_v5 = vld [vmem:[#allocation7 + $0x20] sm:$0xff]  ;;  %s2139_s15 = sshll.u32 %s699_s19, 4  ;;  %p4298_p2 = scmp.ne.s32.totalorder %s4296_s20, 0  ;;  %s4179_s15 = int_to_ptr.vmem [resolvable:$true] %s2139_s15 }
 0x15b   : > { %2794 = vmatprep.subr.bf16.mxu1 %v2793_v33  ;;  %v2777_v52 = vpack.c.bf16 %v2356_v51, %v2355_v50  ;;  %v2359_v59 = vld [vmem:[#allocation2] ss:$0 sm:$0xff]  ;;  %v1086_v0 = vld [vmem:[#allocation7 + $0x10] sm:$0xff]  ;;  %v1087_v1 = vld [vmem:[#allocation7 + $0x18] sm:$0xff]  ;;  %s4177_s24 = scalar_lea.hbm %s4297_s18, %s2395_s1  ;;  %s3405_s22 = scalar_lea.vmem %s4179_s15, 16 }
 0x15c   : > { %2752 = vmatpush3.bf16.msra.mxu0 %v2749_v6  ;;  %v2813_v4 = vpack.c.bf16 %v1087_v1, %v1086_v0  ;;  %v1089_v6 = vld [vmem:[#allocation7 + $0x28] sm:$0xff]  ;;  %v1094_v14 = vld [vmem:[#allocation7 + $0x50] sm:$0xff]  ;;  %v1095_v15 = vld [vmem:[#allocation7 + $0x58] sm:$0xff]  ;;  %p3406_p0 = scmp.ne.s32.totalorder %s4179_s15, %s3405_s22  ;;  %p3412_p12 = scmp.lt.s32.totalorder %s4179_s15, %s3410_s25 }
 0x15d   : > { %2754 = vmatprep.subr.bf16.mxu0 %v2753_v12  ;;  %v2817_v7 = vpack.c.bf16 %v1089_v6, %v1088_v5  ;;  %v2829_v16 = vpack.c.bf16 %v1095_v15, %v1094_v14  ;;  %v1097_v18 = vld [vmem:[#allocation7 + $0x68] sm:$0xff]  ;;  %v1329_v23 = vld [vmem:[%s4226_s7 + $0x8] sm:$0xff]  ;;  %v1330_v25 = vld [vmem:[%s4226_s7 + $0x10] sm:$0xff]  ;;  %p3413_p7 = scmp.lt.s32.totalorder %s3411_s17, %s3405_s22 }
 0x15e   : > { %2796 = vmatpush3.bf16.msra.mxu1 %v2793_v33  ;;  %v2833_v19 = vpack.c.bf16 %v1097_v18, %v1096_v17  ;;  %v1331_v26 = vld [vmem:[%s4226_s7 + $0x18] sm:$0xff]  ;;  %v1175_v35 = vld [vmem:[#allocation8] sm:$0x7f]  ;;  %v1253_v38 = vld [vmem:[#allocation10] sm:$0x7f]  ;;  %p3407_p3 = pnand %p3406_p0, %p4298_p2 }
 0x15f   : > { %2798 = vmatprep.subr.bf16.mxu1 %v2797_v39  ;;  %v2368_v36 = vld [vmem:[%s4226_s7 + $0x38] sm:$0xff]  ;;  %v2369_v37 = vld [vmem:[%s4226_s7 + $0x40] sm:$0xff]  ;;  %v2371_v41 = vld [vmem:[%s4226_s7 + $0x50] sm:$0xff]  ;;  %p3414_p8 = por %p3413_p7, %p3412_p12 }
 0x160   : > { %2756 = vmatpush3.bf16.msra.mxu0 %v2753_v12  ;;  %v1093_v12 = vld [vmem:[#allocation7 + $0x48] sm:$0xff]  ;;  %v1333_v44 = vld [vmem:[%s4226_s7 + $0x28] sm:$0xff]  ;;  %v2377_v53 = vld [vmem:[%s4226_s7 + $0x70] sm:$0xff]  ;;  %p3408_p4 = pneg %p3407_p3 }
 0x161   : > { %2758 = vmatprep.subr.bf16.mxu0 %v2757_v22  ;;  %v2372_v46 = vld [vmem:[%s4226_s7 + $0x58] sm:$0xff]  ;;  %v2374_v50 = vld [vmem:[%s4226_s7 + $0x68] sm:$0xff]  ;;  %v1660_v6 = vld [vmem:[%s4293_s21] sm:$0xff] }
 0x162   : > { %2800 = vmatpush3.bf16.msra.mxu1 %v2797_v39  ;;  %v2846_v39 = vpack.c.bf16 %v2369_v37, %v2368_v36  ;;  %v2378_v54 = vld [vmem:[%s4226_s7 + $0x78] sm:$0xff]  ;;  %v1664_v17 = vld [vmem:[%s4293_s21 + $0x20] sm:$0xff]  ;;  %p3415_p11 = pnand %p3414_p8, %p3408_p4 }
 0x163   : > { %2525 = vmatmul.mubr.msk.f32.vlgmr.msra.gmra.mrb[0].mxu0 %vm726_vm1, %v724_v11  ;;  %2802 = vmatprep.subr.bf16.mxu1 %v2801_v49  ;;  %v1092_v11 = vld [vmem:[#allocation7 + $0x40] sm:$0xff]  ;;  %v1582_v5 = vld [vmem:[#allocation13 + $0x8] sm:$0xff] }
 0x164   : > { %2760 = vmatpush3.bf16.msra.mxu0 %v2757_v22  ;;  %2539 = vmatprep.mubr.msk.f32.mxu0 %vm726_vm1, %v3971_v8  ;;  %v1090_v8 = vld [vmem:[#allocation7 + $0x30] sm:$0xff]  ;;  %v2825_v13 = vpack.c.bf16 %v1093_v12, %v1092_v11  ;;  %v2382_v0 = vld [vmem:[%s4226_s7 + $0x98] sm:$0xff]  ;;  %v1584_v11 = vld [vmem:[#allocation13 + $0x18] sm:$0xff] }
 0x165   : > { %2762 = vmatprep.subr.bf16.mxu0 %v2761_v27  ;;  %v1328_v22 = vld [vmem:[%s4226_s7] sm:$0xff]  ;;  %v1662_v12 = vld [vmem:[%s4293_s21 + $0x10] sm:$0xff]  ;;  %v1663_v14 = vld [vmem:[%s4293_s21 + $0x18] sm:$0xff] }
 0x166   : > { %2804 = vmatpush3.bf16.msra.mxu1 %v2801_v49  ;;  %v2855_v24 = vpack.c.bf16 %v1329_v23, %v1328_v22  ;;  %v1334_v49 = vld [vmem:[%s4226_s7 + $0x30] sm:$0xff]  ;;  %v2882_v15 = vpack.c.bf16 %v1663_v14, %v1662_v12  ;;  %v1815_v37 = vld [vmem:[#allocation16] sm:$0x3] }
 0x167   : > { %2806 = vmatprep.subr.bf16.mxu1 %v2805_v55 }
 0x168   : > { %2764 = vmatpush3.bf16.msra.mxu0 %v2761_v27  ;;  %v2858_v27 = vpack.c.bf16 %v1331_v26, %v1330_v25  ;;  %v2385_v26 = vld [vmem:[#allocation11] ss:$0 sm:$0xff] }
 0x169   : > { %2766 = vmatprep.subr.bf16.mxu0 %v2765_v34 }
 0x16a   : > { %2808 = vmatpush3.bf16.msra.mxu1 %v2805_v55 }
 0x16b   : > { %2810 = vmatprep.subr.bf16.mxu1 %v2809_v58 }
 0x16c   : > { %2768 = vmatpush3.bf16.msra.mxu0 %v2765_v34 }
 0x16d   : > { %2770 = vmatprep.subr.bf16.mxu0 %v2769_v40 }
 0x16f   : > { %2540 = vmatmul.mubr.msk.f32.vlgmr.msra.gmra.mrb[0].mxu0 %vm726_vm1, %v3973_v9  ;;  %v1091_v9 = vld [vmem:[#allocation7 + $0x38] sm:$0xff] }
 0x170   : > { %2772 = vmatpush3.bf16.msra.mxu0 %v2769_v40  ;;  %2554 = vmatprep.mubr.msk.f32.mxu0 %vm726_vm1, %v895_v48  ;;  %v2821_v10 = vpack.c.bf16 %v1091_v9, %v1090_v8  ;;  %v2370_v40 = vld [vmem:[%s4226_s7 + $0x48] sm:$0xff] }
 0x171   : > { %2774 = vmatprep.subr.bf16.mxu0 %v2773_v47  ;;  %v2849_v42 = vpack.c.bf16 %v2371_v41, %v2370_v40  ;;  %v1661_v8 = vld [vmem:[%s4293_s21 + $0x8] sm:$0xff]  ;;  %v2045_v41 = vld [vmem:[%s4294_s10] sm:$0xff] }
 0x172   : > { %v2879_v9 = vpack.c.bf16 %v1661_v8, %v1660_v6 }
 0x174   : > { %2776 = vmatpush3.bf16.msra.mxu0 %v2773_v47  ;;  %v2373_v47 = vld [vmem:[%s4226_s7 + $0x60] sm:$0xff] }
 0x175   : > { %2778 = vmatprep.subr.bf16.mxu0 %v2777_v52  ;;  %v2852_v48 = vpack.c.bf16 %v2373_v47, %v2372_v46 }
 0x178   : > { %2780 = vmatpush3.bf16.msra.mxu0 %v2777_v52 }
 0x179   : > { %2837 = vmatprep.subr.bf16.mxu0 %v3511_v20 }
 0x17b   : > { %2555 = vmatmul.mubr.msk.f32.vlgmr.msra.gmra.mrb[0].mxu0 %vm726_vm1, %v894_v43  ;;  %v1332_v43 = vld [vmem:[%s4226_s7 + $0x20] sm:$0xff] }
 0x17c   : > { %2623 = vmatprep.mubr.msk.f32.mxu0 %vm3512_vm4, %v3513_v21  ;;  %v2861_v45 = vpack.c.bf16 %v1333_v44, %v1332_v43  ;;  %v1968_v44 = vld [vmem:[#allocation17 + $0x10] sm:$0xff] }
 0x24e   : > { %v2556_v60 = vpop.f32.mrb[0].mxu0 }
 0x24f   : > { %v985_v61 = vadd.f32 %v2556_v60, %v2359_v59  ;;  %v966_v62 = vpop.f32.mrb[1].mxu0  ;;  %v2379_v60 = vld [vmem:[%s4226_s7 + $0x80] sm:$0xff] }
 0x250   : > { %v984_v63 = vadd.f32 %v2359_v59, %v966_v62 }
 0x251   : > { %v987_v3 = vmax.f32 %v985_v61, 0.0  ;;  %v2380_v61 = vld [vmem:[%s4226_s7 + $0x88] sm:$0xff] }
 0x252   : > { %v986_v2 = vmax.f32 %v984_v63, 0.0  ;;  %v2867_v62 = vpack.c.bf16 %v2380_v61, %v2379_v60  ;;  %v2381_v63 = vld [vmem:[%s4226_s7 + $0x90] sm:$0xff] }
 0x253   : > { %v2870_v1 = vpack.c.bf16 %v2382_v0, %v2381_v63 }
 0x254   : > { %2585 = vmatprep.mubr.msk.f32.mxu1 %vm1002_vm3, %v986_v2 }
 0x255   : > { %2586 = vmatmul.mubr.msk.f32.vlgmr.msra.gmra.mrb[0].mxu1 %vm1002_vm3, %v987_v3 }
 0x256   : > { %2812 = vmatpush3.bf16.msra.mxu1 %v2809_v58  ;;  %2616 = vmatprep.mubr.msk.f32.mxu1 %vm1002_vm3, %v986_v2  ;;  %v2864_v58 = vpack.c.bf16 %v2378_v54, %v2377_v53  ;;  %v2383_v2 = vld [vmem:[%s4226_s7 + $0xa0] sm:$0xff]  ;;  %v2048_v53 = vld [vmem:[%s4294_s10 + $0x18] sm:$0xff] }
 0x257   : > { %2814 = vmatprep.subr.bf16.mxu1 %v2813_v4 }
 0x25a   : > { %2816 = vmatpush3.bf16.msra.mxu1 %v2813_v4  ;;  %v1581_v4 = vld [vmem:[#allocation13] sm:$0xff] }
 0x25b   : > { %2818 = vmatprep.subr.bf16.mxu1 %v2817_v7 }
 0x25e   : > { %2820 = vmatpush3.bf16.msra.mxu1 %v2817_v7  ;;  %v2873_v7 = vpack.c.bf16 %v1582_v5, %v1581_v4 }
 0x25f   : > { %2822 = vmatprep.subr.bf16.mxu1 %v2821_v10 }
 0x262   : > { %2824 = vmatpush3.bf16.msra.mxu1 %v2821_v10  ;;  %v1583_v10 = vld [vmem:[#allocation13 + $0x10] sm:$0xff] }
 0x263   : > { %2826 = vmatprep.subr.bf16.mxu1 %v2825_v13 }
 0x266   : > { %2828 = vmatpush3.bf16.msra.mxu1 %v2825_v13  ;;  %v2876_v13 = vpack.c.bf16 %v1584_v11, %v1583_v10 }
 0x267   : > { %2830 = vmatprep.subr.bf16.mxu1 %v2829_v16 }
 0x26a   : > { %2832 = vmatpush3.bf16.msra.mxu1 %v2829_v16  ;;  %v1585_v16 = vld [vmem:[#allocation13 + $0x20] sm:$0xff] }
 0x26b   : > { %2834 = vmatprep.subr.bf16.mxu1 %v2833_v19 }
 0x26e   : > { %2836 = vmatpush3.bf16.msra.mxu1 %v2833_v19 }
 0x26f   : > { %2854 = vmatprep.subr.bf16.mxu1 %v3511_v20 }
 0x271   : > { %2617 = vmatmul.mubr.msk.f32.vlgmr.msra.gmra.mrb[2].mxu1 %vm1002_vm3, %v987_v3 }
 0x272   : > { %2664 = vmatprep.mubr.msk.f32.mxu1 %vm3512_vm4, %v3513_v21  ;;  %2856 = vmatpush3.bf16.msra.mxu1 %v2855_v24 }
 0x273   : > { %2857 = vmatprep.subr.bf16.mxu1 %v3511_v20 }
 0x276   : > { %2859 = vmatpush3.bf16.msra.mxu1 %v2858_v27 }
 0x277   : > { %2860 = vmatprep.subr.bf16.mxu1 %v3511_v20 }
 0x27a   : > { %2862 = vmatpush3.bf16.msra.mxu1 %v2861_v45  ;;  %v1969_v45 = vld [vmem:[#allocation17 + $0x18] sm:$0xff] }
 0x27b   : > { %2662 = vmatprep.subr.mxu1 %v3513_v21 }
 0x27e   : > { %2663 = vmatpush3.msra.mxu1 %v1334_v49 }
 0x27f   : > { %2872 = vmatprep.subr.bf16.mxu1 %v3511_v20 }
 0x328   : > { %v2587_v28 = vpop.f32.mrb[0].mxu1 }
 0x329   : > { %v1075_v29 = vpop.f32.mrb[1].mxu1 }
 0x344   : > { %v2618_v30 = vpop.f32.mrb[2].mxu1 }
 0x345   : > { %v1174_v31 = vmax.f32 %v2587_v28, %v2618_v30  ;;  %v1164_v32 = vpop.f32.mrb[3].mxu1 }
 0x346   : > { %v1173_v33 = vmax.f32 %v1075_v29, %v1164_v32 }
 0x348   : > { %v2838_v34 = vpack.c.bf16 %v1174_v31, %v1173_v33  ;;  %v1736_v33 = vld [vmem:[#allocation14] sm:$0x3] }
 0x34a   : > { %2840 = vmatpush3.bf16.msk.msra.mxu0 %vm2839_vm6, %v2838_v34 }
 0x34b   : > { %2841 = vmatprep.subr.bf16.mxu0 %v3511_v20 }
 0x34d   : > { %2624 = vmatmul.mubr.msk.f32.vlgmr.msra.gmra.mrb[2].mxu0 %vm1176_vm7, %v1175_v35 }
 0x34e   : > { %2844 = vmatpush3.bf16.msk.msra.mxu0 %vm2839_vm6, %v2838_v34  ;;  %2630 = vmatprep.mubr.msk.f32.mxu0 %vm3512_vm4, %v3513_v21 }
 0x34f   : > { %2845 = vmatprep.subr.bf16.mxu0 %v3511_v20 }
 0x351   : > { %2631 = vmatmul.mubr.msk.f32.vlgmr.msra.gmra.mrb[4].mxu0 %vm1176_vm7, %v1253_v38  ;;  %v1891_v38 = vld [vmem:[#allocation17] sm:$0xff] }
 0x352   : > { %2847 = vmatpush3.bf16.msra.mxu0 %v2846_v39  ;;  %2647 = vmatprep.mubr.msk.f32.mxu0 %vm3512_vm4, %v3513_v21  ;;  %v1892_v39 = vld [vmem:[#allocation17 + $0x8] sm:$0xff] }
 0x353   : > { %2848 = vmatprep.subr.bf16.mxu0 %v3511_v20  ;;  %v2885_v40 = vpack.c.bf16 %v1892_v39, %v1891_v38 }
 0x356   : > { %2850 = vmatpush3.bf16.msra.mxu0 %v2849_v42  ;;  %v2046_v42 = vld [vmem:[%s4294_s10 + $0x8] sm:$0xff] }
 0x357   : > { %2851 = vmatprep.subr.bf16.mxu0 %v3511_v20  ;;  %v2891_v43 = vpack.c.bf16 %v2046_v42, %v2045_v41 }
 0x35a   : > { %2853 = vmatpush3.bf16.msra.mxu0 %v2852_v48  ;;  %v2888_v48 = vpack.c.bf16 %v1969_v45, %v1968_v44 }
 0x35b   : > { %2645 = vmatprep.subr.mxu0 %v3513_v21 }
 0x35e   : > { %2646 = vmatpush3.msra.mxu0 %v2374_v50 }
 0x35f   : > { %2863 = vmatprep.subr.bf16.mxu0 %v3511_v20 }
 0x420   : > { %v1249_v51 = vpop.f32.mrb[2].mxu0 }
 0x421   : > { %v2625_v52 = vpop.f32.mrb[3].mxu0 }
 0x424   : > { %v1323_v55 = vpop.f32.mrb[4].mxu0 }
 0x425   : > { %v1327_v56 = vmax.f32 %v1249_v51, %v1323_v55  ;;  %v2632_v57 = vpop.f32.mrb[5].mxu0  ;;  %v1890_v55 = vld [vmem:[#allocation19] sm:$0x1] }
 0x427   : > { %v1344_v59 = vrot.slane %v1327_v56, 1  ;;  %2665 = vmatmul.mubr.msk.f32.vlgmr.msra.gmra.mrb[4].mxu1 %vm1345_vm8, %v1327_v56  ;;  %v1498_v3 = vrot.slane %v1327_v56, 2 }
 0x428   : > { %2694 = vmatprep.mubr.msk.f32.mxu1 %vm3512_vm4, %v3513_v21  ;;  %2874 = vmatpush3.bf16.msra.mxu1 %v2873_v7 }
 0x429   : > { %2648 = vmatmul.mubr.msk.f32.vlgmr.msra.gmra.mrb[6].mxu0 %vm1345_vm8, %v1344_v59  ;;  %2875 = vmatprep.subr.bf16.mxu1 %v3511_v20 }
 0x42a   : > { %2865 = vmatpush3.bf16.msra.mxu0 %v2864_v58  ;;  %2681 = vmatprep.mubr.msk.f32.mxu0 %vm3512_vm4, %v3513_v21 }
 0x42b   : > { %2866 = vmatprep.subr.bf16.mxu0 %v3511_v20 }
 0x42c   : > { %2877 = vmatpush3.bf16.msra.mxu1 %v2876_v13 }
 0x42d   : > { %2692 = vmatprep.subr.mxu1 %v3513_v21 }
 0x42e   : > { %2868 = vmatpush3.bf16.msra.mxu0 %v2867_v62 }
 0x42f   : > { %2869 = vmatprep.subr.bf16.mxu0 %v3511_v20 }
 0x430   : > { %2693 = vmatpush3.msra.mxu1 %v1585_v16 }
 0x431   : > { %2710 = vmatprep.subr.mxu1 %v3513_v21 }
 0x432   : > { %2871 = vmatpush3.bf16.msra.mxu0 %v2870_v1 }
 0x433   : > { %2679 = vmatprep.subr.mxu0 %v3513_v21 }
 0x436   : > { %2680 = vmatpush3.msra.mxu0 %v2383_v2 }
 0x437   : > { %2682 = vmatmul.mubr.msk.f32.vlgmr.msra.gmra.mrb[8].mxu0 %vm1345_vm8, %v1498_v3  ;;  %2878 = vmatprep.subr.bf16.mxu0 %v3511_v20 }
 0x438   : > { %2707 = vmatprep.mubr.msk.f32.mxu0 %vm3512_vm4, %v3513_v21  ;;  %2880 = vmatpush3.bf16.msra.mxu0 %v2879_v9 }
 0x439   : > { %2881 = vmatprep.subr.bf16.mxu0 %v3511_v20 }
 0x43c   : > { %2883 = vmatpush3.bf16.msra.mxu0 %v2882_v15 }
 0x43d   : > { %2705 = vmatprep.subr.mxu0 %v3513_v21 }
 0x440   : > { %2706 = vmatpush3.msra.mxu0 %v1664_v17 }
 0x441   : > { %2715 = vmatprep.subr.mxu0 %v3513_v21 }
 0x4fa   : > { %v1486_v18 = vpop.f32.mrb[4].mxu1 }
 0x4fb   : > { %v2666_v19 = vpop.f32.mrb[5].mxu1 }
 0x4fc   : > { %v1414_v22 = vpop.f32.mrb[6].mxu0 }
 0x4fd   : > { %v1487_v23 = vadd.f32 %v1486_v18, %v1414_v22  ;;  %v2649_v24 = vpop.f32.mrb[7].mxu0 }
 0x50a   : > { %v1567_v25 = vpop.f32.mrb[8].mxu0 }
 0x50b   : > { %v1571_v27 = vadd.f32 %v1567_v25, %v1487_v23  ;;  %v2683_v28 = vpop.f32.mrb[9].mxu0 }
 0x50d   : > { %v1579_v29 = vadd.f32 %v2385_v26, %v1571_v27 }
 0x50f   : > { %v1580_v30 = vmax.f32 %v1579_v29, 0.0 }
 0x511   : > { %2695 = vmatmul.mubr.msk.f32.vlgmr.msra.gmra.mrb[6].mxu1 %vm1586_vm9, %v1580_v30  ;;  %2708 = vmatmul.mubr.msk.f32.vlgmr.msra.gmra.mrb[10].mxu0 %vm1586_vm9, %v1580_v30 }
 0x512   : > { %2712 = vmatprep.mubr.msk.f32.mxu1 %vm3512_vm4, %v3513_v21  ;;  %2717 = vmatprep.mubr.msk.f32.mxu0 %vm3512_vm4, %v3513_v21 }
 0x5e4   : > { %v1656_v31 = vpop.f32.mrb[6].mxu1  ;;  %v1731_v32 = vpop.f32.mrb[10].mxu0 }
 0x5e5   : > { %v1735_v34 = vmax.f32 %v1656_v31, %v1731_v32  ;;  %v2696_v35 = vpop.f32.mrb[7].mxu1  ;;  %v2709_v36 = vpop.f32.mrb[11].mxu0 }
 0x5e7   : > { %2711 = vmatpush3.msk.msra.mxu1 %vm1741_vm10, %v1735_v34  ;;  %2716 = vmatpush3.msk.msra.mxu0 %vm1741_vm10, %v1735_v34 }
 0x5e8   : > { %2713 = vmatmul.mubr.msk.f32.vlgmr.msra.gmra.mrb[8].mxu1 %vm1737_vm11, %v1736_v33  ;;  %2718 = vmatmul.mubr.msk.f32.vlgmr.msra.gmra.mrb[12].mxu0 %vm1737_vm11, %v1815_v37 }
 0x5e9   : > { %2884 = vmatprep.subr.bf16.mxu1 %v3511_v20  ;;  %2724 = vmatprep.mubr.msk.f32.mxu1 %vm3512_vm4, %v3513_v21 }
 0x5ea   : > { %2890 = vmatprep.subr.bf16.mxu0 %v3511_v20  ;;  %2742 = vmatprep.mubr.msk.f32.mxu0 %vm3512_vm4, %v3513_v21 }
 0x5eb   : > { %2886 = vmatpush3.bf16.msra.mxu1 %v2885_v40  ;;  %2892 = vmatpush3.bf16.msra.mxu0 %v2891_v43 }
 0x5ec   : > { %2887 = vmatprep.subr.bf16.mxu1 %v3511_v20  ;;  %2893 = vmatprep.subr.bf16.mxu0 %v3511_v20  ;;  %v2047_v20 = vld [vmem:[%s4294_s10 + $0x10] sm:$0xff] }
 0x5ed   : > { %v2894_v54 = vpack.c.bf16 %v2048_v53, %v2047_v20 }
 0x5ef   : > { %2895 = vmatpush3.bf16.msra.mxu0 %v2894_v54 }
 0x6bb   : > { %v1811_v46 = vpop.f32.mrb[8].mxu1  ;;  %v1885_v47 = vpop.f32.mrb[12].mxu0 }
 0x6bc   : > { %v1889_v49 = vmax.f32 %v1811_v46, %v1885_v47  ;;  %v2714_v50 = vpop.f32.mrb[9].mxu1  ;;  %v2719_v51 = vpop.f32.mrb[13].mxu0 }
 0x6be   : > { %2725 = vmatmul.mubr.msk.f32.vlgmr.msra.gmra.mrb[10].mxu1 %vm1893_vm12, %v1889_v49  ;;  %v1970_v52 = vrot.slane %v1889_v49, 1 }
 0x6bf   : > { %2889 = vmatpush3.bf16.msra.mxu1 %v2888_v48  ;;  %2731 = vmatprep.mubr.msk.f32.mxu1 %vm3512_vm4, %v3513_v21  ;;  %v2049_v21 = vld [vmem:[#allocation20] sm:$0x1] }
 0x6c6   : > { %2732 = vmatmul.mubr.msk.f32.vlgmr.msra.gmra.mrb[10].mxu1 %vm1893_vm12, %v1970_v52 }
 0x799   : > { %v2039_v56 = vpop.f32.mrb[10].mxu1 }
 0x79a   : > { %v2896_v57 = vadd.f32 %v2039_v56, %v1890_v55  ;;  %v2733_v58 = vpop.f32.mrb[11].mxu1 }
 0x79c   : > { %v2044_v59 = vmax.f32 %v2896_v57, 0.0 }
 0x79e   : > { %2743 = vmatmul.mubr.msk.f32.vlgmr.msra.gmra.mrb[14].mxu0 %vm2050_vm13, %v2044_v59 }
 0x871   : > { %v2120_v60 = vpop.f32.mrb[14].mxu0 }
 0x872   : > { %v2121_v61 = vadd.f32 %v2120_v60, %v2049_v21  ;;  %v2744_v62 = vpop.f32.mrb[15].mxu0 }
 0x874   : > { %2125 = vst.msk [vmem:[%s699_s19] sm:$0x1] %vm2124_vm14, %v2121_v61 }
 0x875   : > { %3418 = shalt.err (!%p3415_p11)
}
 0x876   : > { %s3419_s29 = scalar_lea.hbm %s4177_s24, 16  ;;  %s3423_s1 = scalar_lea.hbm %s4297_s18, 32 }
 0x877   : > { %p3420_p13 = scmp.ne.s32.totalorder %s4177_s24, %s3419_s29  ;;  %p3424_p9 = scmp.lt.u32.totalorder %s4177_s24, %s4297_s18 }
 0x878   : > { %p3425_p5 = scmp.lt.u32.totalorder %s3423_s1, %s3419_s29  ;;  %p3427_p0 = scmp.lt.u32.totalorder %s3419_s29, %s4177_s24 }
 0x879   : > { %p3421_p1 = pnand %p3420_p13, %p4298_p2 }
 0x87a   : > { %p3426_p10 = por %p3425_p5, %p3424_p9 }
 0x87b   : > { %p3422_p6 = pneg %p3421_p1 }
 0x87c   : > { %p3428_p3 = por %p3427_p0, %p3426_p10 }
 0x87e   : > { %p3429_p4 = pnand %p3428_p3, %p3422_p6 }
 0x880   : > { %3432 = shalt.err (!%p3429_p4)
}
 0x881   : > { %2951 = dma.vmem_to_hbm [thread:$0]  (%p4298_p2), %s4179_s15, 16, %s4177_s24, %s2127_s26  }
 0x882 PF: > { %s4299_s23 = sld [smem:[#allocation34_spill]]  ;;  %s4300_s22 = sld [smem:[#allocation31_spill]] }
 0x883   : > { %s4301_s28 = sld [smem:[#allocation38_spill]] }
 0x888   : > { %p3018_p12 = scmp.ge.s32.totalorder %s4299_s23, 2  ;;  %s2151_s25 = sand.u32 1, %s4300_s22  }
 0x889   : > { %p4302_p7 = scmp.ne.s32.totalorder %s4301_s28, 0  ;;  %s2152_s17 = scalar_lea.sflag [#allocation4], %s2151_s25 }
 0x88b   : > { %p2991_p8 = pnand %p3018_p12, %p4302_p7 }
 0x88d   : > { %3478 = dma.done.wait (!%p2991_p8), %s2152_s17, 16  }
 0x88e   : > { %3480 = vsyncadd (!%p2991_p8), %s2152_s17, 4294967280  ;;  %s4303_s27 = sld [smem:[#allocation35_spill]]  ;;  %s4304_s24 = sld [smem:[#allocation32_spill]] }
 0x88f   : > { %s4305_s25 = sld [smem:[#allocation33_spill]]  ;;  %s4306_s26 = sld [smem:[#allocation36_spill]] }
 0x894   : > { %p34_p11 = scmp.ge.s32.totalorder %s4303_s27, 4  }
 0x896   :  { %36 = sbr.rel (!%p34_p11) target bundleno = 17 (0x11), region = 176 }
 0x89d   :  { %2156 = vsyncpa [#allocation3], 1 }
 0x89e   :  { %2158 = vsyncpa [#allocation3 + $0x1], 1 }
 0x89f   :  { %2159 = vsyncpa [#allocation6], 1 }
 0x8a0   :  { %2160 = vsyncpa [#allocation9], 1 }
 0x8a1   :  { %2161 = vsyncpa [#allocation12], 1 }
 0x8a2   :  { %2162 = vsyncpa [#allocation15], 1 }
 0x8a3   :  { %2163 = vsyncpa [#allocation18], 1 }
 0x8a4   :  { %2164 = vsyncpa [#allocation21], 1 }
 0x8a5   :  { %2165 = vsyncpa [#allocation4], 1 }
 0x8a6   :  { %2167 = vsyncpa [#allocation4 + $0x1], 1 }

</bundles_post_ra>
